<compile_context>
chip_gen: v6e
topology: v6e:2x2x1
jax: 0.10.0
libtpu: 0.0.40
codegen_flags: <defaults>
</compile_context>

<pallas_src>
import numpy as np
import jax
import jax.numpy as jnp
from jax.experimental import pallas as pl
from jax.experimental.pallas import tpu as pltpu

C0 = 299792458.0   # speed of light [m/s]

LANE_W = 1024      # lane-dense last dim (large multiple of 128 -> wide vst)
BLOCK_ROWS = 512   # rows per grid step for large W:
                   # 5 arrays * 2 buffers * (512*1024*4 B) ~= 20 MiB VMEM
VMEM_LIMIT = 32 * 1024 * 1024   # explicit scoped-VMEM limit (covers v5e default)


def _round_up(x, m):
    return ((x + m - 1) // m) * m


def _plan_rows(W):
    """Pick (padded row count, block rows) for W frequency points.

    Guarantees:  rows % block_rows == 0  (no partial tail block),
                 rows is a multiple of 8 (no masked sublane stores),
                 >= 2 grid steps whenever rows > 8 (v7x dual-TC sharding).
    """
    rows = max(1, -(-W // LANE_W))
    rows = max(8, _round_up(rows, 8))
    if rows <= 8:
        return rows, rows                      # single tiny full block
    br = min(BLOCK_ROWS, _round_up(-(-rows // 2), 8))
    rows = _round_up(rows, br)
    return rows, br


def _physical_model_kernel(n_ref, k_ref, wdc_ref, hr_ref, hi_ref):
    """H = 4*n_c/(n_c+1)^2 * exp(-1j*(n_c-1)*wdc),  n_c = n + i*k, wdc = w*d/c.

    All refs are (BR, LANE_W) f32 VMEM tiles.  hr/hi hold Re/Im of H.
    """
    n = n_ref[...]
    k = k_ref[...]
    wdc = wdc_ref[...]                 # w*d/C0, precomputed on host

    # ---- amplitude factor: 4*n_c / (n_c + 1)^2 -------------------------------
    a = n + 1.0                        # Re(n_c + 1)
    aa = a * a
    kk = k * k
    s = aa + kk                        # |n_c + 1|^2
    den_sq = s * s                     # |(n_c+1)^2|^2  == (a^2 + k^2)^2
    den_r = aa - kk                    # Re((n_c+1)^2)
    den_i = 2.0 * a * k                # Im((n_c+1)^2)
    inv = pl.reciprocal(den_sq, approx=True)     # EUP slot
    inv = inv * (2.0 - den_sq * inv)             # one Newton-Raphson refinement
    # numerator n_c * conj((n_c+1)^2); the 4/|den|^2 factor is folded into `amp`
    num_r = n * den_r + k * den_i
    num_i = k * den_r - n * den_i

    # ---- propagation factor: exp(-1j*(n_c - 1)*wdc) ---------------------------
    # -1j*((n-1) + i k)*wdc = k*wdc + i*(1-n)*wdc
    mag = jnp.exp(k * wdc)             # EUP
    phase = (1.0 - n) * wdc
    amp = (4.0 * inv) * mag            # 4/|den|^2 and |prop| applied ONCE
    # TODO(synk): for much thicker slabs / higher w, reduce `phase` mod 2*pi and
    # guard mag against f32 overflow (n_c = n - i*k convention also possible).
    exp_r = amp * jnp.cos(phase)
    exp_i = amp * jnp.sin(phase)

    # ---- H = num * exp --------------------------------------------------------
    hr_ref[...] = num_r * exp_r - num_i * exp_i
    hi_ref[...] = num_r * exp_i + num_i * exp_r


def physical_model_pallas(n2, k2, wdc2, block_rows=None):
    """Pallas-backed Physical_model.

    n2, k2, wdc2: (rows, LANE_W) f32 arrays in the padded lane-dense layout,
                  rows an exact multiple of block_rows.
    Returns (Re H, Im H), each (rows, LANE_W) f32; complex assembly is left to
    the caller so the hot path makes no extra HBM pass.
    """
    rows, lanes = n2.shape
    br = block_rows if block_rows is not None else (
        rows if rows <= BLOCK_ROWS else BLOCK_ROWS)
    assert rows % br == 0, "host-side padding must make rows a multiple of br"
    grid = (rows // br,)

    spec = pl.BlockSpec((br, lanes), lambda i: (i, 0))

    hr, hi = pl.pallas_call(
        _physical_model_kernel,
        out_shape=(
            jax.ShapeDtypeStruct((rows, lanes), jnp.float32),
            jax.ShapeDtypeStruct((rows, lanes), jnp.float32),
        ),
        grid_spec=pltpu.PrefetchScalarGridSpec(
            num_scalar_prefetch=0,
            grid=grid,
            in_specs=[spec, spec, spec],
            out_specs=(spec, spec),
        ),
        compiler_params=pltpu.CompilerParams(
            dimension_semantics=("parallel",),     # shard over 2 TCs on v7x
            vmem_limit_bytes=VMEM_LIMIT,           # 512-row blocks fit on v5e too
        ),
    )(n2, k2, wdc2)
    return hr, hi


class FrequencyDependentModel2:
    """JAX equivalent of the PyTorch module (forward pass only)."""

    def __init__(self, w_tensor, d, ICs_n, ICs_k):
        self.w_flat = jnp.asarray(w_tensor, jnp.float32).reshape(-1)
        self.W = int(self.w_flat.shape[0])
        self.d = float(d)
        # Layout planning + all padding done ONCE here (off the forward path).
        self.rows, self.block_rows = _plan_rows(self.W)
        pad = self.rows * LANE_W - self.W
        # w * d / C0 precomputed on the host: kills one VALU mul per vreg and
        # the whole SMEM scalar-prefetch path.
        wdc = self.w_flat * (self.d / C0)
        self.wdc_padded = jnp.pad(wdc, (0, pad)).reshape(self.rows, LANE_W)
        # Parameters mirror torch.full_like(w_tensor, IC) on the first W
        # entries; the padded tail stays at the constant and is ignored.
        self.n = jnp.full((self.rows, LANE_W), ICs_n, jnp.float32)
        self.k = jnp.full((self.rows, LANE_W), ICs_k, jnp.float32)
        self.loss_history = []

    def forward(self, Physical_model):
        # n_complex = n + 1j*k is handled as real/imag parts inside the kernel.
        # Returns (Re H, Im H) in the padded layout; complex64 should be
        # assembled once, outside any optimizer loop.
        # TODO(synk): for tiny W (demo scale) pallas_call launch overhead
        # dominates; a plain-JAX fallback or batching many (n,k) evaluations
        # per call is the right production move there.
        return Physical_model(self.n, self.k, self.wdc_padded, self.block_rows)

    def forward_complex(self, Physical_model):
        hr, hi = self.forward(Physical_model)
        return jax.lax.complex(hr, hi).reshape(-1)[: self.W]

    # TODO(synk): train_model uses torch.optim.LBFGS + autograd closures; that
    # host-side optimizer loop is training glue, not a kernel concern.


def _reference_forward(n, k, w, d):
    """Plain-JAX complex reference for verification."""
    n_c = n.astype(jnp.complex64) + 1j * k.astype(jnp.complex64)
    frac = 4.0 * n_c / (n_c + 1.0) ** 2
    prop = jnp.exp(-1j * (n_c - 1.0) * w.astype(jnp.complex64) * d / C0)
    return frac * prop


if __name__ == "__main__":
    key = jax.random.PRNGKey(0)

    # Small, deterministic setup: 1500 frequency points (deliberately not a
    # multiple of the 1024-lane tile, to exercise the padded-tail path).
    W = 1500
    base = jnp.linspace(0.1e12, 3.0e12, W) * 2.0 * jnp.pi       # rad/s
    jitter = jax.random.uniform(key, (W,), minval=-1e9, maxval=1e9)
    w_tensor = (base + jitter).astype(jnp.float32)

    d = 500e-6        # 500 um slab
    ICs_n = 2.5       # initial refractive index
    ICs_k = 0.02      # initial extinction coefficient

    model = FrequencyDependentModel2(w_tensor, d, ICs_n, ICs_k)

    # Hot path: kernel returns Re/Im in the padded layout, no complex assembly.
    hr, hi = model.forward(physical_model_pallas)
    jax.block_until_ready((hr, hi))

    # Complex H assembled once, off the hot path, only for verification.
    H_pred = np.asarray(jax.lax.complex(hr, hi)).reshape(-1)[:W]

    n_flat = jnp.asarray(np.asarray(model.n).reshape(-1)[:W])
    k_flat = jnp.asarray(np.asarray(model.k).reshape(-1)[:W])
    H_ref = _reference_forward(n_flat, k_flat, model.w_flat, model.d)

    # Newton-Raphson refined reciprocal -> tolerance tightened vs. previous.
    np.testing.assert_allclose(H_pred, np.asarray(H_ref), rtol=2e-3, atol=2e-4)

    print("KERNEL_OK")
</pallas_src>

<mosaic_0001>
module attributes {stable_mosaic.version = 11 : i64} {
  func.func @_physical_model_kernel(%arg0: i32, %arg1: memref<8x1024xf32, #tpu.memory_space<vmem>>, %arg2: memref<8x1024xf32, #tpu.memory_space<vmem>>, %arg3: memref<8x1024xf32, #tpu.memory_space<vmem>>, %arg4: memref<8x1024xf32, #tpu.memory_space<vmem>>, %arg5: memref<8x1024xf32, #tpu.memory_space<vmem>>) attributes {dimension_semantics = [#tpu.dimension_semantics<parallel>], iteration_bounds = array<i64: 1>, scalar_prefetch = 0 : i64, scratch_operands = 0 : i64, tpu.core_type = #tpu.core_type<tc>, window_params = [{transform_indices = @transform_0, window_bounds = array<i64: 8, 1024>}, {transform_indices = @transform_1, window_bounds = array<i64: 8, 1024>}, {transform_indices = @transform_2, window_bounds = array<i64: 8, 1024>}, {transform_indices = @transform_3, window_bounds = array<i64: 8, 1024>}, {transform_indices = @transform_4, window_bounds = array<i64: 8, 1024>}]} {
    %c0 = arith.constant 0 : index
    %c0_0 = arith.constant 0 : index
    %0 = vector.load %arg1[%c0, %c0_0] : memref<8x1024xf32, #tpu.memory_space<vmem>>, vector<8x1024xf32>
    %c0_1 = arith.constant 0 : index
    %c0_2 = arith.constant 0 : index
    %1 = vector.load %arg2[%c0_1, %c0_2] : memref<8x1024xf32, #tpu.memory_space<vmem>>, vector<8x1024xf32>
    %c0_3 = arith.constant 0 : index
    %c0_4 = arith.constant 0 : index
    %2 = vector.load %arg3[%c0_3, %c0_4] : memref<8x1024xf32, #tpu.memory_space<vmem>>, vector<8x1024xf32>
    %cst = arith.constant 1.000000e+00 : f32
    %3 = vector.broadcast %cst : f32 to vector<8x1024xf32>
    %4 = arith.addf %0, %3 : vector<8x1024xf32>
    %5 = arith.mulf %4, %4 : vector<8x1024xf32>
    %6 = arith.mulf %1, %1 : vector<8x1024xf32>
    %7 = arith.addf %5, %6 : vector<8x1024xf32>
    %8 = arith.mulf %7, %7 : vector<8x1024xf32>
    %9 = arith.subf %5, %6 : vector<8x1024xf32>
    %cst_5 = arith.constant 2.000000e+00 : f32
    %10 = vector.broadcast %cst_5 : f32 to vector<8x1024xf32>
    %11 = arith.mulf %10, %4 : vector<8x1024xf32>
    %12 = arith.mulf %11, %1 : vector<8x1024xf32>
    %13 = tpu.reciprocal %8 {approx = true} : vector<8x1024xf32> -> vector<8x1024xf32>
    %14 = arith.mulf %8, %13 : vector<8x1024xf32>
    %cst_6 = arith.constant 2.000000e+00 : f32
    %15 = vector.broadcast %cst_6 : f32 to vector<8x1024xf32>
    %16 = arith.subf %15, %14 : vector<8x1024xf32>
    %17 = arith.mulf %13, %16 : vector<8x1024xf32>
    %18 = arith.mulf %0, %9 : vector<8x1024xf32>
    %19 = arith.mulf %1, %12 : vector<8x1024xf32>
    %20 = arith.addf %18, %19 : vector<8x1024xf32>
    %21 = arith.mulf %1, %9 : vector<8x1024xf32>
    %22 = arith.mulf %0, %12 : vector<8x1024xf32>
    %23 = arith.subf %21, %22 : vector<8x1024xf32>
    %24 = arith.mulf %1, %2 : vector<8x1024xf32>
    %25 = math.exp %24 : vector<8x1024xf32>
    %cst_7 = arith.constant 1.000000e+00 : f32
    %26 = vector.broadcast %cst_7 : f32 to vector<8x1024xf32>
    %27 = arith.subf %26, %0 : vector<8x1024xf32>
    %28 = arith.mulf %27, %2 : vector<8x1024xf32>
    %cst_8 = arith.constant 4.000000e+00 : f32
    %29 = vector.broadcast %cst_8 : f32 to vector<8x1024xf32>
    %30 = arith.mulf %29, %17 : vector<8x1024xf32>
    %31 = arith.mulf %30, %25 : vector<8x1024xf32>
    %32 = math.cos %28 : vector<8x1024xf32>
    %33 = arith.mulf %31, %32 : vector<8x1024xf32>
    %34 = math.sin %28 : vector<8x1024xf32>
    %35 = arith.mulf %31, %34 : vector<8x1024xf32>
    %36 = arith.mulf %20, %33 : vector<8x1024xf32>
    %37 = arith.mulf %23, %35 : vector<8x1024xf32>
    %38 = arith.subf %36, %37 : vector<8x1024xf32>
    %c0_9 = arith.constant 0 : index
    %c0_10 = arith.constant 0 : index
    %39 = vector.load %arg4[%c0_9, %c0_10] : memref<8x1024xf32, #tpu.memory_space<vmem>>, vector<8x1024xf32>
    tpu.vector_store %arg4[%c0_9, %c0_10], %38 {strides = array<i32>} : memref<8x1024xf32, #tpu.memory_space<vmem>>, vector<8x1024xf32>,
    %40 = arith.mulf %20, %35 : vector<8x1024xf32>
    %41 = arith.mulf %23, %33 : vector<8x1024xf32>
    %42 = arith.addf %40, %41 : vector<8x1024xf32>
    %c0_11 = arith.constant 0 : index
    %c0_12 = arith.constant 0 : index
    %43 = vector.load %arg5[%c0_11, %c0_12] : memref<8x1024xf32, #tpu.memory_space<vmem>>, vector<8x1024xf32>
    tpu.vector_store %arg5[%c0_11, %c0_12], %42 {strides = array<i32>} : memref<8x1024xf32, #tpu.memory_space<vmem>>, vector<8x1024xf32>,
    return
  }
  func.func @transform_0(%arg0: i32) -> (i32, i32) {
    %c0_i32 = arith.constant 0 : i32
    %c0_i32_0 = arith.constant 0 : i32
    return %arg0, %c0_i32 : i32, i32
  }
  func.func @transform_1(%arg0: i32) -> (i32, i32) {
    %c0_i32 = arith.constant 0 : i32
    %c0_i32_0 = arith.constant 0 : i32
    return %arg0, %c0_i32 : i32, i32
  }
  func.func @transform_2(%arg0: i32) -> (i32, i32) {
    %c0_i32 = arith.constant 0 : i32
    %c0_i32_0 = arith.constant 0 : i32
    return %arg0, %c0_i32 : i32, i32
  }
  func.func @transform_3(%arg0: i32) -> (i32, i32) {
    %c0_i32 = arith.constant 0 : i32
    %c0_i32_0 = arith.constant 0 : i32
    return %arg0, %c0_i32 : i32, i32
  }
  func.func @transform_4(%arg0: i32) -> (i32, i32) {
    %c0_i32 = arith.constant 0 : i32
    %c0_i32_0 = arith.constant 0 : i32
    return %arg0, %c0_i32 : i32, i32
  }
}

</mosaic_0001>

<bundles_post_ra>
// kernel: tpu_custom_call.1
= control target key start
LH: loop header
LB: loop body
LE: loop exit
PB: predicated region body
PF: predicated region fallthrough
CT: control target
= control target key end

     0   :  { %10 = vsyncpa [#allocation3], 0  ;;  %s3520_s0 = inlined_call_operand.hbm [shape: f32[8,1024], index: 0, kind: input, shape index: {}]   ;;  %s3521_s1 = inlined_call_operand.hbm [shape: f32[8,1024], index: 1, kind: input, shape index: {}]   ;;  %s3522_s2 = inlined_call_operand.hbm [shape: f32[8,1024], index: 2, kind: input, shape index: {}]   ;;  %s3523_s3 = inlined_call_operand.hbm [shape: f32[8,1024], index: 3, kind: output, shape index: {0}]   ;;  %s3524_s4 = inlined_call_operand.hbm [shape: f32[8,1024], index: 4, kind: output, shape index: {1}]  }
   0x1   :  { %11 = vsyncpa [#allocation6], 0 }
   0x2   :  { %12 = vsyncpa [#allocation4], 0 }
   0x3   :  { %13 = vsyncpa [#allocation10], 0  ;;  %s2322_s15 = smov [#allocation5]   ;;  %s2323_s17 = smov [#allocation2]  }
   0x4   :  { %s30_s16 = sshll.u32 %s2322_s15, 4  ;;  %s20_s18 = sshll.u32 %s2323_s17, 4  ;;  %s31_s16 = int_to_ptr.vmem [resolvable:$true] %s30_s16  ;;  %s21_s18 = int_to_ptr.vmem [resolvable:$true] %s20_s18 }
   0x5   :  { %s2222_s19 = scalar_lea.vmem %s31_s16, 1024  ;;  %p2227_p1 = scmp.lt.s32.totalorder %s31_s16, %s31_s16 }
   0x6   :  { %p2223_p0 = scmp.ne.s32.totalorder %s31_s16, %s2222_s19  ;;  %p2228_p2 = scmp.lt.s32.totalorder %s2222_s19, %s2222_s19 }
   0x8   :  { %p2229_p3 = por %p2228_p2, %p2227_p1 }
   0xa   :  { %p2230_p4 = pnand %p2229_p3, %p2223_p0 }
   0xc   :  { %2233 = shalt.err (!%p2230_p4)
}
   0xd   :  { %33 = dma.hbm_to_vmem [thread:$0]  %s3521_s1, 1024, %s31_s16, [#allocation6]  }
   0xe   :  { %s2242_s22 = scalar_lea.vmem %s21_s18, 1024  ;;  %p2247_p6 = scmp.lt.s32.totalorder %s21_s18, %s21_s18 }
   0xf   :  { %p2243_p5 = scmp.ne.s32.totalorder %s21_s18, %s2242_s22  ;;  %p2248_p7 = scmp.lt.s32.totalorder %s2242_s22, %s2242_s22 }
  0x11   :  { %p2249_p8 = por %p2248_p7, %p2247_p6 }
  0x13   :  { %p2250_p9 = pnand %p2249_p8, %p2243_p5 }
  0x15   :  { %2253 = shalt.err (!%p2250_p9)
}
  0x16   :  { %23 = dma.hbm_to_vmem [thread:$0]  %s3520_s0, 1024, %s21_s18, [#allocation3]  }
  0x17   :  { %s2324_s25 = smov [#allocation7]  }
  0x18   :  { %s40_s26 = sshll.u32 %s2324_s25, 4  ;;  %s41_s26 = int_to_ptr.vmem [resolvable:$true] %s40_s26 }
  0x19   :  { %s2262_s27 = scalar_lea.vmem %s41_s26, 1024  ;;  %p2267_p11 = scmp.lt.s32.totalorder %s41_s26, %s41_s26 }
  0x1a   :  { %p2263_p10 = scmp.ne.s32.totalorder %s41_s26, %s2262_s27  ;;  %p2268_p12 = scmp.lt.s32.totalorder %s2262_s27, %s2262_s27 }
  0x1c   :  { %p2269_p13 = por %p2268_p12, %p2267_p11 }
  0x1e   :  { %p2270_p0 = pnand %p2269_p13, %p2263_p10 }
  0x20   :  { %2273 = shalt.err (!%p2270_p0)
}
  0x21   :  { %43 = dma.hbm_to_vmem [thread:$0]  %s3522_s2, 1024, %s41_s26, [#allocation6]  }
  0x22   :  { %2314 = dma.done.wait [#allocation3], 1024  }
  0x23   :  { %2315 = vsyncadd [#allocation3], 4294966272 }
  0x24   :  { %2316 = dma.done.wait [#allocation6], 2048  }
  0x25   :  { %2317 = vsyncadd [#allocation6], 4294965248  ;;  %v2367_v0 = vld [vmem:[#allocation2] sm:$0xff]  ;;  %v2372_v3 = vld [vmem:[#allocation2 + $0x8] sm:$0xff]  ;;  %v3530_v26 = vmov 683565275  }
  0x26   :  { %v2369_v1 = vld [vmem:[#allocation7] sm:$0xff]  ;;  %v245_v2 = vsub.f32 1.0, %v2367_v0  ;;  %v246_v5 = vsub.f32 1.0, %v2372_v3  ;;  %v2379_v7 = vld [vmem:[#allocation7 + $0x8] sm:$0xff]  ;;  %v2388_v13 = vadd.f32 1.0, %v2367_v0  ;;  %s2331_s0 = smov [#allocation8]  }
  0x27   :  { %v2385_v12 = vld [vmem:[#allocation5] sm:$0xff]  ;;  %v3528_v28 = vmov 2475754826   ;;  %v3526_v30 = vmov 2131351028   ;;  %s2019_s2 = sshll.u32 %s2331_s0, 4  ;;  %s2020_s2 = int_to_ptr.vmem [resolvable:$true] %s2019_s2 }
  0x28   :  { %v2375_v4 = vmul.f32 %v245_v2, %v2369_v1  ;;  %v2383_v10 = vmul.f32 %v246_v5, %v2379_v7  ;;  %v2395_v17 = vmul.f32 %v2385_v12, %v2385_v12  ;;  %v2399_v18 = vmul.f32 %v2388_v13, %v2388_v13  ;;  %s2332_s29 = smov [#allocation9]   ;;  %s2274_s5 = scalar_lea.vmem %s2020_s2, 1024 }
  0x29   :  { %v3534_v33 = vmov 2102212464   ;;  %v3548_v35 = vmov 920167782   ;;  %v3540_v43 = vmov 1326507024   ;;  %p2275_p1 = scmp.ne.s32.totalorder %s2020_s2, %s2274_s5  ;;  %p2279_p2 = scmp.lt.s32.totalorder %s2020_s2, %s2020_s2 }
  0x2a   :  { %v280_v6 = vand.u32 2139095040, %v2375_v4  ;;  %v277_v8 = vand.u32 2147483647, %v2375_v4  ;;  %v383_v16 = vand.u32 2139095040, %v2383_v10  ;;  %v101_v32 = vadd.f32 %v2395_v17, %v2399_v18  ;;  %s2029_s30 = sshll.u32 %s2332_s29, 4  ;;  %p2280_p3 = scmp.lt.s32.totalorder %s2274_s5, %s2274_s5  ;;  %s2030_s30 = int_to_ptr.vmem [resolvable:$true] %s2029_s30 }
  0x2b   :  { %v380_v2 = vand.u32 2147483647, %v2383_v10  ;;  %vm279_vm12 = vcmp.lt.s32.totalorder %v2375_v4, 0 }
  0x2c   :  { %v281_v9 = vshrl.u32 %v280_v6, 23  ;;  %v284_v14 = vand.u32 8388607, %v277_v8  ;;  %v384_v21 = vshrl.u32 %v383_v16, 23  ;;  %v2414_v58 = vmul.f32 %v101_v32, %v101_v32  ;;  %p2281_p4 = por %p2280_p3, %p2279_p2 }
  0x2d   :  { %vm2531_vm14 = vcmp.le.f32.partialorder %v277_v8, 0.7853982 }
  0x2e   :  { %v2043_v11 = vadd.s32 4294967169, %v281_v9  ;;  %v285_v19 = vor.u32 8388608, %v284_v14  ;;  %v2047_v24 = vadd.s32 4294967169, %v384_v21  ;;  %v2424_v14 = vld [vmem:[#allocation5 + $0x8] sm:$0xff]  ;;  %2150 = vrcp.f32 %v2414_v58  ;;  %p2282_p5 = pnand %p2281_p4, %p2275_p1 }
  0x2f   :  { %v2431_v21 = vmul.f32 %v2424_v14, %v2424_v14 }
  0x30   :  { %v287_v15 = vadd.s32 1, %v2043_v11  ;;  %v325_v37 = vshll.u32 %v285_v19, 8  ;;  %v390_v48 = vadd.s32 1, %v2047_v24 }
  0x32   :  { %vm288_vm0 = vcmp.gt.s32.totalorder %v287_v15, 0  ;;  %vm391_vm5 = vcmp.gt.s32.totalorder %v390_v48, 0 }
  0x33   :  { %v289_v20 = vsel %vm288_vm0, %v287_v15, 0  ;;  %v2427_v15 = vadd.f32 1.0, %v2372_v3  ;;  %v392_v16 = vsel %vm391_vm5, %v390_v48, 0 }
  0x34   :  { %v291_v22 = vand.u32 31, %v289_v20  ;;  %v290_v23 = vshrl.u32 %v289_v20, 5  ;;  %v394_v19 = vand.u32 31, %v392_v16 }
  0x36   :  { %v292_v25 = vsub.s32 32, %v291_v22  ;;  %v294_v27 = vshll.u32 %v3530_v26, %v291_v22  ;;  %v297_v29 = vshll.u32 %v3528_v28, %v291_v22  ;;  %v300_v31 = vshll.u32 %v3526_v30, %v291_v22 }
  0x37   :  { %v303_v34 = vshll.u32 %v3534_v33, %v291_v22  ;;  %v306_v36 = vshll.u32 %v3548_v35, %v291_v22  ;;  %vm309_vm1 = vcmp.lt.s32.totalorder %v290_v23, 1  ;;  %vm312_vm2 = vcmp.lt.s32.totalorder %v290_v23, 4 }
  0x38   :  { %v293_v38 = vshrl.u32 %v3530_v26, %v292_v25  ;;  %v295_v39 = vshrl.u32 %v3528_v28, %v292_v25  ;;  %v298_v40 = vshrl.u32 %v3526_v30, %v292_v25  ;;  %v301_v41 = vshrl.u32 %v3534_v33, %v292_v25 }
  0x39   :  { %v304_v42 = vshrl.u32 %v3548_v35, %v292_v25  ;;  %v307_v44 = vshrl.u32 %v3540_v43, %v292_v25  ;;  %vm310_vm3 = vcmp.lt.s32.totalorder %v290_v23, 2  ;;  %vm311_vm4 = vcmp.lt.s32.totalorder %v290_v23, 3 }
  0x3a   :  { %v296_v45 = vor.u32 %v295_v39, %v294_v27  ;;  %v299_v46 = vor.u32 %v298_v40, %v297_v29  ;;  %v302_v47 = vor.u32 %v301_v41, %v300_v31  ;;  %v387_v22 = vand.u32 8388607, %v380_v2 }
  0x3b   :  { %v305_v49 = vor.u32 %v304_v42, %v303_v34  ;;  %v308_v50 = vor.u32 %v307_v44, %v306_v36  ;;  %v395_v24 = vsub.s32 32, %v394_v19  ;;  %v2441_v25 = vmul.f32 %v2427_v15, %v2427_v15 }
  0x3c   :  { %v313_v51 = vsel %vm309_vm1, %v293_v38, %v296_v45  ;;  %v314_v52 = vsel %vm312_vm2, %v302_v47, 2102212464  ;;  %v317_v53 = vsel %vm309_vm1, %v296_v45, %v299_v46  ;;  %v321_v54 = vsel %vm309_vm1, %v299_v46, %v302_v47 }
  0x3d   :  { %v315_v55 = vsel %vm311_vm4, %v299_v46, %v314_v52  ;;  %v318_v56 = vsel %vm312_vm2, %v305_v49, 920167782  ;;  %v322_v57 = vsel %vm312_vm2, %v308_v50, 1326507024  ;;  %v397_v27 = vshll.u32 %v3530_v26, %v394_v19 }
  0x3e   :  { %v319_v59 = vsel %vm311_vm4, %v302_v47, %v318_v56  ;;  %v323_v60 = vsel %vm311_vm4, %v305_v49, %v322_v57  ;;  %v316_v61 = vsel %vm310_vm3, %v313_v51, %v315_v55  ;;  %v400_v29 = vshll.u32 %v3528_v28, %v394_v19 }
  0x3f   :  { %v320_v62 = vsel %vm310_vm3, %v317_v53, %v319_v59  ;;  %v324_v63 = vsel %vm310_vm3, %v321_v54, %v323_v60  ;;  %v332_v20 = vmul.u32 %v325_v37, %v316_v61  ;;  %v403_v31 = vshll.u32 %v3526_v30, %v394_v19 }
  0x40   :  { %v2417_v5 = vmul.u32.u64.low %v325_v37, %v324_v63  ;;  %v2418_v6 = vmul.u32.u64.high %v325_v37, %v324_v63, %v2417_v5  ;;  %v2420_v9 = vmul.u32.u64.low %v325_v37, %v320_v62  ;;  %v2421_v11 = vmul.u32.u64.high %v325_v37, %v320_v62, %v2420_v9 }
  0x41   :  { %v393_v34 = vshrl.u32 %v392_v16, 5  ;;  %v398_v36 = vshrl.u32 %v3528_v28, %v395_v24  ;;  %v401_v37 = vshrl.u32 %v3526_v30, %v395_v24  ;;  %v388_v39 = vor.u32 8388608, %v387_v22 }
  0x42   :  { %vm334_vm6 = vc.u32 %v2418_v6, %v2420_v9  ;;  %v335_v23 = vadd.s32 1, %v2421_v11  ;;  %v404_v40 = vshrl.u32 %v3534_v33, %v395_v24  ;;  %v406_v41 = vshll.u32 %v3534_v33, %v394_v19 }
  0x43   :  { %v399_v42 = vor.u32 %v398_v36, %v397_v27  ;;  %v402_v44 = vor.u32 %v401_v37, %v400_v29  ;;  %v407_v45 = vshrl.u32 %v3548_v35, %v395_v24  ;;  %v409_v46 = vshll.u32 %v3548_v35, %v394_v19  ;;  %v2468_v19 = vld [vmem:[#allocation2 + $0x10] sm:$0xff] }
  0x44   :  { %v336_v32 = vsel %vm334_vm6, %v335_v23, %v2421_v11  ;;  %v102_v48 = vadd.f32 %v2431_v21, %v2441_v25  ;;  %v405_v49 = vor.u32 %v404_v40, %v403_v31  ;;  %v410_v50 = vshrl.u32 %v3540_v43, %v395_v24  ;;  %v2151_v31 = vpop.eup %2150 }
  0x45   :  { %v337_v38 = vadd.s32 %v336_v32, %v332_v20  ;;  %v396_v51 = vshrl.u32 %v3530_v26, %v395_v24  ;;  %v408_v52 = vor.u32 %v407_v45, %v406_v41  ;;  %vm412_vm7 = vcmp.lt.s32.totalorder %v393_v34, 1  ;;  %v2484_v41 = vld [vmem:[#allocation7 + $0x10] sm:$0xff] }
  0x46   :  { %vm414_vm8 = vcmp.lt.s32.totalorder %v393_v34, 3  ;;  %v411_v54 = vor.u32 %v410_v50, %v409_v46  ;;  %vm413_vm9 = vcmp.lt.s32.totalorder %v393_v34, 2  ;;  %vm415_vm10 = vcmp.lt.s32.totalorder %v393_v34, 4 }
  0x47   :  { %v338_v47 = vadd.s32 536870912, %v337_v38  ;;  %v417_v55 = vsel %vm415_vm10, %v405_v49, 2102212464  ;;  %v420_v56 = vsel %vm412_vm7, %v399_v42, %v402_v44  ;;  %v421_v57 = vsel %vm415_vm10, %v408_v52, 920167782 }
  0x48   :  { %v428_v59 = vshll.u32 %v388_v39, 8  ;;  %v221_v60 = vmul.f32 %v2369_v1, %v2385_v12  ;;  %v422_v62 = vsel %vm414_vm8, %v405_v49, %v421_v57  ;;  %v424_v63 = vsel %vm412_vm7, %v402_v44, %v405_v49 }
  0x49   :  { %v2457_v53 = vshrl.u32 %v338_v47, 30  ;;  %v2465_v5 = vmul.f32 %v102_v48, %v102_v48  ;;  %v423_v11 = vsel %vm413_vm9, %v420_v56, %v422_v62  ;;  %v425_v16 = vsel %vm415_vm10, %v411_v54, 1326507024 }
  0x4a   :  { %v416_v22 = vsel %vm412_vm7, %v396_v51, %v399_v42  ;;  %v418_v23 = vsel %vm414_vm8, %v402_v44, %v417_v55  ;;  %v426_v1 = vsel %vm414_vm8, %v408_v52, %v425_v16  ;;  %v229_v32 = vmul.f32 1.442695, %v221_v60 }
  0x4b   :  { %v340_v61 = vshll.u32 %v2457_v53, 30  ;;  %v427_v24 = vsel %vm413_vm9, %v424_v63, %v426_v1  ;;  %v2474_v27 = vmul.u32.u64.low %v428_v59, %v423_v11  ;;  %v2475_v29 = vmul.u32.u64.high %v428_v59, %v423_v11, %v2474_v27  ;;  %v2509_v11 = vld [vmem:[#allocation5 + $0x10] sm:$0xff] }
  0x4c   :  { %v247_v37 = vsub.f32 1.0, %v2468_v19  ;;  %2152 = vrcp.f32 %v2465_v5  ;;  %v2481_v39 = vmul.u32.u64.low %v428_v59, %v427_v24  ;;  %v2482_v40 = vmul.u32.u64.high %v428_v59, %v427_v24, %v2481_v39 }
  0x4d   :  { %v341_v20 = vsub.s32 %v337_v38, %v340_v61  ;;  %v419_v38 = vsel %vm413_vm9, %v416_v22, %v418_v23  ;;  %v222_v44 = vmul.f32 %v2379_v7, %v2424_v14  ;;  %v125_v45 = vmul.f32 2.0, %v2388_v13 }
  0x4e   :  { %v149_v46 = vmul.f32 %v2151_v31, %v2414_v58  ;;  %v438_v47 = vadd.s32 1, %v2475_v29  ;;  %2154 = vpow2.f32 %v229_v32  ;;  %v435_v49 = vmul.u32 %v428_v59, %v419_v38 }
  0x4f   :  { %v343_v36 = vsub.s32 0, %v341_v20  ;;  %v2492_v34 = vmul.f32 %v247_v37, %v2484_v41  ;;  %v117_v50 = vsub.f32 %v2399_v18, %v2395_v17  ;;  %v126_v52 = vmul.f32 2.0, %v2427_v15 }
  0x50   :  { %v231_v54 = vmul.f32 1.442695, %v222_v44  ;;  %vm437_vm11 = vc.u32 %v2482_v40, %v2474_v27  ;;  %v133_v7 = vmul.f32 %v125_v45, %v2385_v12  ;;  %v157_v13 = vsub.f32 2.0, %v149_v46 }
  0x51   :  { %v2044_v42 = vmin.u32 %v343_v36, %v341_v20  ;;  %v439_v58 = vsel %vm437_vm11, %v438_v47, %v2475_v29  ;;  %v486_v55 = vand.u32 2139095040, %v2492_v34  ;;  %v333_v56 = vadd.s32 %v2420_v9, %v2418_v6 }
  0x52   :  { %v440_v17 = vadd.s32 %v439_v58, %v435_v49  ;;  %v173_v18 = vmul.f32 %v117_v50, %v2367_v0  ;;  %v2507_v57 = vadd.f32 1.0, %v2468_v19  ;;  %v165_v16 = vmul.f32 %v2151_v31, %v157_v13 }
  0x53   :  { %v345_v48 = vclz %v2044_v42  ;;  %v487_v59 = vshrl.u32 %v486_v55, 23  ;;  %v181_v22 = vmul.f32 %v133_v7, %v2385_v12  ;;  %v483_v6 = vand.u32 2147483647, %v2492_v34 }
  0x54   :  { %v441_v63 = vadd.s32 536870912, %v440_v17  ;;  %v363_v24 = vsub.s32 4, %v2457_v53  ;;  %v197_v32 = vmul.f32 %v117_v50, %v2385_v12  ;;  %v2523_v31 = vmul.f32 %v2509_v11, %v2509_v11 }
  0x55   :  { %v2045_v51 = vadd.s32 4294967294, %v345_v48  ;;  %v2051_v9 = vadd.s32 4294967169, %v487_v59  ;;  %v205_v38 = vmul.f32 %v133_v7, %v2367_v0  ;;  %v261_v45 = vmul.f32 4.0, %v165_v16 }
  0x56   :  { %v2514_v29 = vshrl.u32 %v441_v63, 30  ;;  %v490_v46 = vand.u32 8388607, %v483_v6  ;;  %v364_v0 = vsel %vm279_vm12, %v363_v24, %v2457_v53  ;;  %2156 = vpow2.f32 %v231_v54 }
  0x57   :  { %vm2046_vm13 = vcmp.lt.s32.totalorder %v2045_v51, 0  ;;  %v493_v36 = vadd.s32 1, %v2051_v9  ;;  %v2550_v58 = vsub.f32 %v197_v32, %v205_v38  ;;  %vm382_vm4 = vcmp.lt.s32.totalorder %v2383_v10, 0 }
  0x58   :  { %v348_v15 = vsel %vm2046_vm13, 0, %v2045_v51  ;;  %v443_v44 = vshll.u32 %v2514_v29, 30  ;;  %v2542_v51 = vadd.f32 %v181_v22, %v173_v18  ;;  %v2560_v18 = vmul.f32 %v126_v52, %v2424_v14 }
  0x59   :  { %v349_v60 = vsub.s32 32, %v348_v15  ;;  %v350_v61 = vshll.u32 %v341_v20, %v348_v15  ;;  %v353_v62 = vsub.s32 4294967266, %v348_v15  ;;  %v2519_v20 = vmul.f32 %v2507_v57, %v2507_v57  ;;  %v2525_v37 = vpop.eup %2152 }
  0x5a   :  { %vm494_vm15 = vcmp.gt.s32.totalorder %v493_v36, 0  ;;  %v2540_v49 = vsub.s32 %v440_v17, %v443_v44  ;;  %v2546_v8 = vmul.f32 %v2525_v37, %v2465_v5  ;;  %v366_v17 = vsel %vm2531_vm14, 0, %v364_v0 }
  0x5b   :  { %v351_v23 = vshrl.u32 %v333_v56, %v349_v60  ;;  %v354_v1 = vadd.s32 127, %v353_v62  ;;  %v2155_v50 = vpop.eup %2154  ;;  %v103_v7 = vadd.f32 %v2523_v31, %v2519_v20  ;;  %v495_v13 = vsel %vm494_vm15, %v493_v36, 0 }
  0x5c   :  { %v2554_v56 = vsub.f32 %v2441_v25, %v2431_v21  ;;  %v446_v53 = vsub.s32 0, %v2540_v49  ;;  %v491_v5 = vor.u32 8388608, %v490_v46  ;;  %v497_v15 = vand.u32 31, %v495_v13 }
  0x5d   :  { %v352_v39 = vor.u32 %v351_v23, %v350_v61  ;;  %v355_v42 = vshll.u32 %v354_v1, 23  ;;  %v2562_v59 = vmul.f32 %v2155_v50, %v261_v45  ;;  %v2565_v62 = vand.u32 3, %v366_v17 }
  0x5e   :  { %v2048_v61 = vmin.u32 %v446_v53, %v2540_v49  ;;  %v158_v21 = vsub.f32 2.0, %v2546_v8  ;;  %v2568_v25 = vmul.f32 %v103_v7, %v103_v7  ;;  %v498_v63 = vsub.s32 32, %v497_v15 }
  0x5f   :  { %v356_v47 = vor.u32 4788187, %v355_v42  ;;  %v359_v48 = vcvt.s32.f32 %v352_v39  ;;  %v1202_v22 = vadd.s32 3, %v366_v17  ;;  %v500_v52 = vshll.u32 %v3530_v26, %v497_v15 }
  0x60   :  { %v448_v9 = vclz %v2048_v61  ;;  %v436_v23 = vadd.s32 %v2474_v27, %v2482_v40  ;;  %v496_v1 = vshrl.u32 %v495_v13, 5  ;;  %v503_v54 = vshll.u32 %v3528_v28, %v497_v15 }
  0x61   :  { %v357_v55 = vand.u32 2147483647, %v356_v47  ;;  %v2574_v24 = vshll.u32 %v491_v5, 8  ;;  %v499_v38 = vshrl.u32 %v3530_v26, %v498_v63  ;;  %v501_v39 = vshrl.u32 %v3528_v28, %v498_v63 }
  0x62   :  { %v2049_v36 = vadd.s32 4294967294, %v448_v9  ;;  %v504_v44 = vshrl.u32 %v3526_v30, %v498_v63  ;;  %v506_v27 = vshll.u32 %v3526_v30, %v497_v15  ;;  %v507_v40 = vshrl.u32 %v3534_v33, %v498_v63 }
  0x63   :  { %v360_v60 = vmul.f32 %v359_v48, %v357_v55  ;;  %v502_v45 = vor.u32 %v501_v39, %v500_v52  ;;  %v509_v46 = vshll.u32 %v3534_v33, %v497_v15  ;;  %v510_v13 = vshrl.u32 %v3548_v35, %v498_v63 }
  0x64   :  { %vm2050_vm0 = vcmp.lt.s32.totalorder %v2049_v36, 0  ;;  %v505_v48 = vor.u32 %v504_v44, %v503_v54  ;;  %v508_v0 = vor.u32 %v507_v40, %v506_v27  ;;  %v512_v55 = vshll.u32 %v3548_v35, %v497_v15  ;;  %v2600_v54 = vpop.eup %2156 }
  0x65   :  { %v361_v16 = vxor.u32 2147483648, %v360_v60  ;;  %v451_v47 = vsel %vm2050_vm0, 0, %v2049_v36  ;;  %v513_v53 = vshrl.u32 %v3540_v43, %v498_v63  ;;  %vm515_vm1 = vcmp.lt.s32.totalorder %v496_v1, 1 }
  0x66   :  { %v452_v50 = vsub.s32 32, %v451_v47  ;;  %v453_v7 = vshll.u32 %v2540_v49, %v451_v47  ;;  %v456_v12 = vsub.s32 4294967266, %v451_v47  ;;  %vm516_vm2 = vcmp.lt.s32.totalorder %v496_v1, 2  ;;  %v2614_v47 = vld [vmem:[#allocation2 + $0x18] sm:$0xff] }
  0x67   :  { %v362_v32 = vsel %vm279_vm12, %v361_v16, %v360_v60  ;;  %v511_v60 = vor.u32 %v510_v13, %v509_v46  ;;  %vm517_vm3 = vcmp.lt.s32.totalorder %v496_v1, 3  ;;  %v514_v61 = vor.u32 %v513_v53, %v512_v55  ;;  %v2629_v53 = vld [vmem:[#allocation7 + $0x18] sm:$0xff] }
  0x68   :  { %v365_v42 = vsel %vm2531_vm14, %v2375_v4, %v362_v32  ;;  %v454_v17 = vshrl.u32 %v436_v23, %v452_v50  ;;  %v457_v5 = vadd.s32 127, %v456_v12  ;;  %vm518_vm5 = vcmp.lt.s32.totalorder %v496_v1, 4 }
  0x69   :  { %2158 = vcosq.f32 %v365_v42  ;;  %v519_v16 = vsel %vm515_vm1, %v499_v38, %v502_v45  ;;  %v523_v49 = vsel %vm515_vm1, %v502_v45, %v505_v48  ;;  %vm2596_vm6 = vcmp.le.f32.partialorder %v380_v2, 0.7853982 }
  0x6a   :  { %2160 = vsinq.f32 %v365_v42  ;;  %v455_v63 = vor.u32 %v454_v17, %v453_v7  ;;  %v458_v9 = vshll.u32 %v457_v5, 23  ;;  %v520_v52 = vsel %vm518_vm5, %v508_v0, 2102212464 }
  0x6b   :  { %v524_v23 = vsel %vm518_vm5, %v511_v60, 920167782  ;;  %v521_v32 = vsel %vm517_vm3, %v505_v48, %v520_v52  ;;  %v527_v38 = vsel %vm515_vm1, %v505_v48, %v508_v0  ;;  %v528_v39 = vsel %vm518_vm5, %v514_v61, 1326507024 }
  0x6c   :  { %v525_v36 = vsel %vm517_vm3, %v508_v0, %v524_v23  ;;  %vm369_vm7 = vweird.f32 %v2375_v4  ;;  %v1203_v42 = vand.u32 3, %v1202_v22  ;;  %v459_v2 = vor.u32 4788187, %v458_v9 }
  0x6d   :  { %v462_v44 = vcvt.s32.f32 %v455_v63  ;;  %v526_v27 = vsel %vm516_vm2, %v523_v49, %v525_v36  ;;  %2162 = vrcp.f32 %v2568_v25  ;;  %v529_v40 = vsel %vm517_vm3, %v511_v60, %v528_v39 }
  0x6e   :  { %v2610_v45 = vmul.u32.u64.low %v2574_v24, %v526_v27  ;;  %v2611_v46 = vmul.u32.u64.high %v2574_v24, %v526_v27, %v2610_v45  ;;  %v460_v48 = vand.u32 2147483647, %v459_v2  ;;  %v522_v0 = vsel %vm516_vm2, %v519_v16, %v521_v32 }
  0x6f   :  { %v530_v22 = vsel %vm516_vm2, %v527_v38, %v529_v40  ;;  %v2619_v50 = vadd.f32 1.0, %v2614_v47  ;;  %vm371_vm8 = vcmp.lt.s32.totalorder %v2565_v62, 2  ;;  %v466_v7 = vsub.s32 4, %v2514_v29 }
  0x70   :  { %v2624_v12 = vmul.u32.u64.low %v2574_v24, %v530_v22  ;;  %v2625_v13 = vmul.u32.u64.high %v2574_v24, %v530_v22, %v2624_v12  ;;  %vm372_vm9 = vcmp.eq.s32.totalorder %v2565_v62, 0  ;;  %vm375_vm10 = vcmp.eq.s32.totalorder %v2565_v62, 2 }
  0x71   :  { %vm1204_vm11 = vcmp.lt.s32.totalorder %v1203_v42, 2  ;;  %v463_v55 = vmul.f32 %v462_v44, %v460_v48  ;;  %vm1208_vm12 = vcmp.eq.s32.totalorder %v1203_v42, 2  ;;  %v538_v17 = vmul.u32 %v2574_v24, %v522_v0  ;;  %v2643_v24 = vld [vmem:[#allocation5 + $0x18] sm:$0xff] }
  0x72   :  { %v541_v5 = vadd.s32 1, %v2611_v46  ;;  %v248_v60 = vsub.f32 1.0, %v2614_v47  ;;  %vm1205_vm13 = vcmp.eq.s32.totalorder %v1203_v42, 0  ;;  %v2636_v63 = vmul.f32 %v2619_v50, %v2619_v50 }
  0x73   :  { %v464_v49 = vxor.u32 2147483648, %v463_v55  ;;  %v467_v52 = vsel %vm382_vm4, %v466_v7, %v2514_v29  ;;  %vm540_vm14 = vc.u32 %v2625_v13, %v2610_v45  ;;  %v2664_v0 = vmul.f32 %v2643_v24, %v2643_v24 }
  0x74   :  { %v2646_v23 = vmul.f32 %v248_v60, %v2629_v53  ;;  %v542_v39 = vsel %vm540_vm14, %v541_v5, %v2611_v46  ;;  %v166_v42 = vmul.f32 %v2525_v37, %v158_v21  ;;  %v223_v4 = vmul.f32 %v2484_v41, %v2509_v11 }
  0x75   :  { %v465_v38 = vsel %vm382_vm4, %v464_v49, %v463_v55  ;;  %v543_v27 = vadd.s32 %v542_v39, %v538_v17  ;;  %v469_v55 = vsel %vm2596_vm6, 0, %v467_v52  ;;  %v182_v41 = vmul.f32 %v2560_v18, %v2424_v14 }
  0x76   :  { %v2159_v1 = vpop.eup %2158  ;;  %v468_v44 = vsel %vm2596_vm6, %v2383_v10, %v465_v38  ;;  %v589_v5 = vand.u32 2139095040, %v2646_v23  ;;  %v3532_v21 = vand.u32 2147483647, %v2646_v23  ;;  %v1306_v15 = vadd.s32 3, %v469_v55 }
  0x77   :  { %v2161_v61 = vpop.eup %2160  ;;  %v376_v16 = vxor.u32 2147483648, %v2159_v1  ;;  %2164 = vcosq.f32 %v468_v44  ;;  %v544_v7 = vadd.s32 536870912, %v543_v27  ;;  %v206_v52 = vmul.f32 %v2560_v18, %v2372_v3 }
  0x78   :  { %v373_v9 = vxor.u32 2147483648, %v2161_v61  ;;  %2166 = vsinq.f32 %v468_v44  ;;  %v233_v38 = vmul.f32 1.442695, %v223_v4  ;;  %vm472_vm15 = vweird.f32 %v2383_v10 }
  0x79   :  { %v377_v32 = vsel %vm375_vm10, %v376_v16, %v2161_v61  ;;  %v1210_v36 = vsel %vm1208_vm12, %v376_v16, %v2161_v61  ;;  %v2685_v17 = vshrl.u32 %v544_v7, 30  ;;  %v590_v16 = vshrl.u32 %v589_v5, 23 }
  0x7a   :  { %v374_v29 = vsel %vm372_vm9, %v2159_v1, %v373_v9  ;;  %v1207_v2 = vsel %vm1205_vm13, %v2159_v1, %v373_v9  ;;  %v174_v1 = vmul.f32 %v2554_v56, %v2372_v3  ;;  %v2688_v60 = vpop.eup %2162  ;;  %v198_v9 = vmul.f32 %v2554_v56, %v2424_v14 }
  0x7b   :  { %v378_v40 = vsel %vm371_vm8, %v374_v29, %v377_v32  ;;  %v1211_v48 = vsel %vm1204_vm11, %v1207_v2, %v1210_v36  ;;  %v546_v61 = vshll.u32 %v2685_v17, 30  ;;  %v262_v32 = vmul.f32 4.0, %v166_v42 }
  0x7c   :  { %v379_v46 = vsel %vm369_vm7, nan, %v378_v40  ;;  %v1212_v22 = vsel %vm369_vm7, nan, %v1211_v48  ;;  %v127_v36 = vmul.f32 2.0, %v2507_v57  ;;  %v2055_v29 = vadd.s32 4294967169, %v590_v16 }
  0x7d   :  { %v2671_v12 = vmul.f32 %v379_v46, %v2562_v59  ;;  %v2674_v62 = vmul.f32 %v1212_v22, %v2562_v59  ;;  %v104_v59 = vadd.f32 %v2664_v0, %v2636_v63  ;;  %v2705_v39 = vsub.s32 %v543_v27, %v546_v61 }
  0x7e   :  { %v473_v2 = vand.u32 3, %v469_v55  ;;  %v593_v40 = vand.u32 8388607, %v3532_v21  ;;  %v2711_v48 = vadd.f32 %v182_v41, %v174_v1  ;;  %v1307_v14 = vand.u32 3, %v1306_v15 }
  0x7f   :  { %v1949_v8 = vmul.f32 %v2671_v12, %v2542_v51  ;;  %v1957_v37 = vmul.f32 %v2674_v62, %v2550_v58  ;;  %v2707_v44 = vmul.f32 %v104_v59, %v104_v59  ;;  %v549_v56 = vsub.s32 0, %v2705_v39 }
  0x80   :  { %v596_v3 = vadd.s32 1, %v2055_v29  ;;  %v2714_v18 = vsub.f32 %v198_v9, %v206_v52  ;;  %v270_v57 = vmul.f32 %v2600_v54, %v262_v32  ;;  %v2720_v27 = vsub.f32 %v2519_v20, %v2523_v31 }
  0x81   :  { %v1965_v49 = vsub.f32 %v1949_v8, %v1957_v37  ;;  %v2723_v46 = vmul.f32 %v127_v36, %v2509_v11  ;;  %v2727_v22 = vmul.f32 %v2688_v60, %v2568_v25  ;;  %2168 = vpow2.f32 %v233_v38 }
  0x82   :  { %v2052_v7 = vmin.u32 %v549_v56, %v2705_v39  ;;  %vm474_vm0 = vcmp.lt.s32.totalorder %v473_v2, 2  ;;  %2170 = vrcp.f32 %v2707_v44  ;;  %v594_v54 = vor.u32 8388608, %v593_v40 }
  0x83   :  { %1973 = vst [vmem:[#allocation8] sm:$0xff] %v1965_v49  ;;  %vm597_vm1 = vcmp.gt.s32.totalorder %v596_v3, 0  ;;  %vm478_vm2 = vcmp.eq.s32.totalorder %v473_v2, 2  ;;  %vm1312_vm3 = vcmp.eq.s32.totalorder %v1307_v14, 2  ;;  %vm475_vm4 = vcmp.eq.s32.totalorder %v473_v2, 0 }
  0x84   :  { %v2165_v42 = vpop.eup %2164  ;;  %v551_v20 = vclz %v2052_v7  ;;  %v598_v31 = vsel %vm597_vm1, %v596_v3, 0  ;;  %vm1308_vm5 = vcmp.lt.s32.totalorder %v1307_v14, 2  ;;  %vm1309_vm6 = vcmp.eq.s32.totalorder %v1307_v14, 0 }
  0x85   :  { %v2167_v55 = vpop.eup %2166  ;;  %v479_v1 = vxor.u32 2147483648, %v2165_v42  ;;  %v539_v4 = vadd.s32 %v2610_v45, %v2625_v13  ;;  %v600_v8 = vand.u32 31, %v598_v31  ;;  %v2733_v41 = vshrl.u32 %v598_v31, 5 }
  0x86   :  { %v476_v25 = vxor.u32 2147483648, %v2167_v55  ;;  %v2053_v5 = vadd.s32 4294967294, %v551_v20  ;;  %v2735_v15 = vshll.u32 %v594_v54, 8  ;;  %vm485_vm8 = vcmp.lt.s32.totalorder %v2492_v34, 0 }
  0x87   :  { %v480_v37 = vsel %vm478_vm2, %v479_v1, %v2167_v55  ;;  %v1314_v59 = vsel %vm1312_vm3, %v479_v1, %v2167_v55  ;;  %v601_v49 = vsub.s32 32, %v600_v8  ;;  %v603_v36 = vshll.u32 %v3530_v26, %v600_v8 }
  0x88   :  { %v477_v61 = vsel %vm475_vm4, %v2165_v42, %v476_v25  ;;  %v1311_v16 = vsel %vm1309_vm6, %v2165_v42, %v476_v25  ;;  %vm2054_vm7 = vcmp.lt.s32.totalorder %v2053_v5, 0  ;;  %v606_v54 = vshll.u32 %v3528_v28, %v600_v8 }
  0x89   :  { %v481_v9 = vsel %vm474_vm0, %v477_v61, %v480_v37  ;;  %v1315_v52 = vsel %vm1308_vm5, %v1311_v16, %v1314_v59  ;;  %v554_v32 = vsel %vm2054_vm7, 0, %v2053_v5  ;;  %v602_v2 = vshrl.u32 %v3530_v26, %v601_v49 }
  0x8a   :  { %v482_v45 = vsel %vm472_vm15, nan, %v481_v9  ;;  %v1316_v13 = vsel %vm472_vm15, nan, %v1315_v52  ;;  %v555_v38 = vsub.s32 32, %v554_v32  ;;  %v556_v29 = vshll.u32 %v2705_v39, %v554_v32 }
  0x8b   :  { %v2744_v40 = vmul.f32 %v482_v45, %v270_v57  ;;  %v2746_v14 = vmul.f32 %v1316_v13, %v270_v57  ;;  %v559_v56 = vsub.s32 4294967266, %v554_v32  ;;  %v604_v7 = vshrl.u32 %v3528_v28, %v601_v49 }
  0x8c   :  { %v557_v3 = vshrl.u32 %v539_v4, %v555_v38  ;;  %v607_v42 = vshrl.u32 %v3526_v30, %v601_v49  ;;  %v609_v57 = vshll.u32 %v3526_v30, %v600_v8  ;;  %v610_v25 = vshrl.u32 %v3534_v33, %v601_v49 }
  0x8d   :  { %v1950_v10 = vmul.f32 %v2744_v40, %v2711_v48  ;;  %v1958_v39 = vmul.f32 %v2746_v14, %v2714_v18  ;;  %v560_v20 = vadd.s32 127, %v559_v56  ;;  %v605_v55 = vor.u32 %v604_v7, %v603_v36 }
  0x8e   :  { %v558_v31 = vor.u32 %v557_v3, %v556_v29  ;;  %v608_v1 = vor.u32 %v607_v42, %v606_v54  ;;  %v2759_v4 = vpop.eup %2168  ;;  %v612_v59 = vshll.u32 %v3534_v33, %v600_v8  ;;  %v613_v61 = vshrl.u32 %v3548_v35, %v601_v49 }
  0x8f   :  { %v1966_v5 = vsub.f32 %v1950_v10, %v1958_v39  ;;  %v561_v37 = vshll.u32 %v560_v20, 23  ;;  %v2763_v16 = vpop.eup %2170  ;;  %v611_v52 = vor.u32 %v610_v25, %v609_v57  ;;  %v615_v32 = vshll.u32 %v3548_v35, %v600_v8  ;;  %v2774_v25 = vld [vmem:[#allocation2 + $0x20] sm:$0xff] }
  0x90   :  { %v565_v9 = vcvt.s32.f32 %v558_v31  ;;  %v616_v45 = vshrl.u32 %v3540_v43, %v601_v49  ;;  %v614_v13 = vor.u32 %v613_v61, %v612_v59  ;;  %vm618_vm9 = vcmp.lt.s32.totalorder %v2733_v41, 1 }
  0x91   :  { %1974 = vst [vmem:[#allocation8 + $0x8] sm:$0xff] %v1966_v5  ;;  %v562_v36 = vor.u32 4788187, %v561_v37  ;;  %vm619_vm10 = vcmp.lt.s32.totalorder %v2733_v41, 2  ;;  %vm620_vm11 = vcmp.lt.s32.totalorder %v2733_v41, 3  ;;  %vm621_vm12 = vcmp.lt.s32.totalorder %v2733_v41, 4 }
  0x92   :  { %v617_v38 = vor.u32 %v616_v45, %v615_v32  ;;  %v622_v29 = vsel %vm618_vm9, %v602_v2, %v605_v55  ;;  %v623_v3 = vsel %vm621_vm12, %v611_v52, 2102212464  ;;  %v626_v7 = vsel %vm618_vm9, %v605_v55, %v608_v1 }
  0x93   :  { %v563_v56 = vand.u32 2147483647, %v562_v36  ;;  %v627_v54 = vsel %vm621_vm12, %v614_v13, 920167782  ;;  %v624_v8 = vsel %vm620_vm11, %v608_v1, %v623_v3  ;;  %v630_v49 = vsel %vm618_vm9, %v608_v1, %v611_v52 }
  0x94   :  { %v628_v42 = vsel %vm620_vm11, %v611_v52, %v627_v54  ;;  %v631_v10 = vsel %vm621_vm12, %v617_v38, 1326507024  ;;  %v569_v20 = vsub.s32 4, %v2685_v17  ;;  %v625_v2 = vsel %vm619_vm10, %v622_v29, %v624_v8  ;;  %v2795_v52 = vld [vmem:[#allocation7 + $0x20] sm:$0xff] }
  0x95   :  { %v566_v39 = vmul.f32 %v565_v9, %v563_v56  ;;  %v629_v57 = vsel %vm619_vm10, %v626_v7, %v628_v42  ;;  %v632_v31 = vsel %vm620_vm11, %v614_v13, %v631_v10  ;;  %vm2787_vm13 = vcmp.le.f32.partialorder %v483_v6, 0.7853982  ;;  %v2805_v13 = vld [vmem:[#allocation5 + $0x20] sm:$0xff] }
  0x96   :  { %v633_v55 = vsel %vm619_vm10, %v630_v49, %v632_v31  ;;  %v2781_v5 = vmul.u32.u64.low %v2735_v15, %v629_v57  ;;  %v2782_v37 = vmul.u32.u64.high %v2735_v15, %v629_v57, %v2781_v5  ;;  %v2798_v41 = vadd.f32 1.0, %v2774_v25 }
  0x97   :  { %v567_v59 = vxor.u32 2147483648, %v566_v39  ;;  %v2792_v61 = vmul.u32.u64.low %v2735_v15, %v633_v55  ;;  %v2793_v9 = vmul.u32.u64.high %v2735_v15, %v633_v55, %v2792_v61  ;;  %v249_v32 = vsub.f32 1.0, %v2774_v25 }
  0x98   :  { %v159_v45 = vsub.f32 2.0, %v2727_v22  ;;  %v641_v36 = vmul.u32 %v2735_v15, %v625_v2  ;;  %v570_v38 = vsel %vm485_vm8, %v569_v20, %v2685_v17  ;;  %v644_v56 = vadd.s32 1, %v2782_v37 }
  0x99   :  { %v568_v6 = vsel %vm485_vm8, %v567_v59, %v566_v39  ;;  %v2815_v3 = vmul.f32 %v249_v32, %v2795_v52  ;;  %v175_v22 = vmul.f32 %v2720_v27, %v2468_v19  ;;  %v183_v15 = vmul.f32 %v2723_v46, %v2509_v11  ;;  %v2854_v32 = vld [vmem:[#allocation2 + $0x28] sm:$0xff] }
  0x9a   :  { %v571_v29 = vsel %vm2787_vm13, %v2492_v34, %v568_v6  ;;  %vm643_vm14 = vc.u32 %v2793_v9, %v2781_v5  ;;  %v2826_v7 = vmul.f32 %v2798_v41, %v2798_v41  ;;  %v2830_v54 = vmul.f32 %v2805_v13, %v2805_v13 }
  0x9b   :  { %2172 = vcosq.f32 %v571_v29  ;;  %v645_v17 = vsel %vm643_vm14, %v644_v56, %v2782_v37  ;;  %v167_v8 = vmul.f32 %v2688_v60, %v159_v45  ;;  %v572_v42 = vsel %vm2787_vm13, 0, %v570_v38 }
  0x9c   :  { %2174 = vsinq.f32 %v571_v29  ;;  %v646_v49 = vadd.s32 %v645_v17, %v641_v36  ;;  %v692_v10 = vand.u32 2139095040, %v2815_v3  ;;  %v199_v39 = vmul.f32 %v2720_v27, %v2509_v11 }
  0x9d   :  { %v207_v20 = vmul.f32 %v2723_v46, %v2468_v19  ;;  %v224_v57 = vmul.f32 %v2629_v53, %v2643_v24  ;;  %v3525_v31 = vand.u32 2147483647, %v2815_v3  ;;  %v1410_v60 = vadd.s32 3, %v572_v42 }
  0x9e   :  { %v647_v2 = vadd.s32 536870912, %v646_v49  ;;  %v693_v55 = vshrl.u32 %v692_v10, 23  ;;  %v128_v37 = vmul.f32 2.0, %v2619_v50  ;;  %v105_v1 = vadd.f32 %v2830_v54, %v2826_v7 }
  0x9f   :  { %v263_v59 = vmul.f32 4.0, %v167_v8  ;;  %v2848_v27 = vadd.f32 %v183_v15, %v175_v22  ;;  %v2850_v19 = vsub.f32 %v199_v39, %v207_v20  ;;  %v235_v46 = vmul.f32 1.442695, %v224_v57 }
  0xa0   :  { %v2846_v61 = vshrl.u32 %v647_v2, 30  ;;  %v2059_v11 = vadd.s32 4294967169, %v693_v55  ;;  %v696_v53 = vand.u32 8388607, %v3525_v31  ;;  %vm575_vm15 = vweird.f32 %v2492_v34 }
  0xa1   :  { %3556 = vst [vmem:[#allocation15_spill] sm:$0xff] %v2850_v19  ;;  %v576_v50 = vand.u32 3, %v572_v42  ;;  %v1411_v36 = vand.u32 3, %v1410_v60  ;;  %v2860_v38 = vsub.f32 %v2636_v63, %v2664_v0  ;;  %v2863_v29 = vmul.f32 %v128_v37, %v2643_v24  ;;  %v2875_v0 = vld [vmem:[#allocation7 + $0x28] sm:$0xff] }
  0xa2   :  { %v649_v45 = vshll.u32 %v2846_v61, 30  ;;  %v699_v6 = vadd.s32 1, %v2059_v11  ;;  %v2865_v56 = vmul.f32 %v105_v1, %v105_v1  ;;  %v271_v22 = vmul.f32 %v2759_v4, %v263_v59 }
  0xa3   :  { %v250_v17 = vsub.f32 1.0, %v2854_v32  ;;  %v2873_v8 = vmul.f32 %v2763_v16, %v2707_v44  ;;  %2176 = vpow2.f32 %v235_v46  ;;  %v697_v42 = vor.u32 8388608, %v696_v53 }
  0xa4   :  { %v2868_v15 = vsub.s32 %v646_v49, %v649_v45  ;;  %vm700_vm0 = vcmp.gt.s32.totalorder %v699_v6, 0  ;;  %vm577_vm1 = vcmp.lt.s32.totalorder %v576_v50, 2  ;;  %vm578_vm2 = vcmp.eq.s32.totalorder %v576_v50, 0 }
  0xa5   :  { %v701_v63 = vsel %vm700_vm0, %v699_v6, 0  ;;  %vm581_vm3 = vcmp.eq.s32.totalorder %v576_v50, 2  ;;  %vm1412_vm4 = vcmp.lt.s32.totalorder %v1411_v36, 2  ;;  %vm1416_vm5 = vcmp.eq.s32.totalorder %v1411_v36, 2 }
  0xa6   :  { %v652_v10 = vsub.s32 0, %v2868_v15  ;;  %2178 = vrcp.f32 %v2865_v56  ;;  %v703_v49 = vand.u32 31, %v701_v63  ;;  %vm1413_vm6 = vcmp.eq.s32.totalorder %v1411_v36, 0 }
  0xa7   :  { %v2881_v57 = vmul.f32 %v250_v17, %v2875_v0  ;;  %v642_v55 = vadd.s32 %v2781_v5, %v2793_v9  ;;  %v2885_v37 = vshll.u32 %v697_v42, 8  ;;  %v672_v46 = vsub.s32 4, %v2846_v61 }
  0xa8   :  { %v2173_v4 = vpop.eup %2172  ;;  %v2056_v44 = vmin.u32 %v652_v10, %v2868_v15  ;;  %v704_v60 = vsub.s32 32, %v703_v49  ;;  %v2890_v6 = vshrl.u32 %v701_v63, 5  ;;  %v706_v17 = vshll.u32 %v3530_v26, %v703_v49 }
  0xa9   :  { %v2175_v39 = vpop.eup %2174  ;;  %v582_v20 = vxor.u32 2147483648, %v2173_v4  ;;  %v795_v42 = vand.u32 2139095040, %v2881_v57  ;;  %v709_v50 = vshll.u32 %v3528_v28, %v703_v49  ;;  %vm588_vm12 = vcmp.lt.s32.totalorder %v2646_v23, 0 }
  0xaa   :  { %v579_v2 = vxor.u32 2147483648, %v2175_v39  ;;  %v654_v11 = vclz %v2056_v44  ;;  %v705_v44 = vshrl.u32 %v3530_v26, %v704_v60  ;;  %v707_v63 = vshrl.u32 %v3528_v28, %v704_v60 }
  0xab   :  { %v583_v1 = vsel %vm581_vm3, %v582_v20, %v2175_v39  ;;  %v1418_v59 = vsel %vm1416_vm5, %v582_v20, %v2175_v39  ;;  %v716_v31 = vshrl.u32 %v3548_v35, %v704_v60  ;;  %v719_v21 = vshrl.u32 %v3540_v43, %v704_v60 }
  0xac   :  { %v580_v53 = vsel %vm578_vm2, %v2173_v4, %v579_v2  ;;  %v1415_v45 = vsel %vm1413_vm6, %v2173_v4, %v579_v2  ;;  %v2057_v9 = vadd.s32 4294967294, %v654_v11  ;;  %v712_v11 = vshll.u32 %v3526_v30, %v703_v49 }
  0xad   :  { %v584_v10 = vsel %vm577_vm1, %v580_v53, %v583_v1  ;;  %v1419_v5 = vsel %vm1412_vm4, %v1415_v45, %v1418_v59  ;;  %v708_v1 = vor.u32 %v707_v63, %v706_v17  ;;  %v710_v59 = vshrl.u32 %v3526_v30, %v704_v60 }
  0xae   :  { %v585_v39 = vsel %vm575_vm15, nan, %v584_v10  ;;  %v1420_v20 = vsel %vm575_vm15, nan, %v1419_v5  ;;  %vm2058_vm7 = vcmp.lt.s32.totalorder %v2057_v9, 0  ;;  %v718_v30 = vshll.u32 %v3548_v35, %v703_v49 }
  0xaf   :  { %v2902_v4 = vmul.f32 %v585_v39, %v271_v22  ;;  %v2904_v2 = vmul.f32 %v1420_v20, %v271_v22  ;;  %v657_v36 = vsel %vm2058_vm7, 0, %v2057_v9  ;;  %v711_v5 = vor.u32 %v710_v59, %v709_v50 }
  0xb0   :  { %v658_v45 = vsub.s32 32, %v657_v36  ;;  %v659_v10 = vshll.u32 %v2868_v15, %v657_v36  ;;  %v662_v22 = vsub.s32 4294967266, %v657_v36  ;;  %v713_v39 = vshrl.u32 %v3534_v33, %v704_v60  ;;  %v2916_v17 = vpop.eup %2176 }
  0xb1   :  { %3557 = vst [vmem:[#allocation16_spill] sm:$0xff] %v2902_v4  ;;  %3558 = vst [vmem:[#allocation17_spill] sm:$0xff] %v2904_v2  ;;  %v1951_v34 = vmul.f32 %v2902_v4, %v2848_v27  ;;  %v1959_v53 = vmul.f32 %v2904_v2, %v2850_v19  ;;  %v715_v9 = vshll.u32 %v3534_v33, %v703_v49  ;;  %vm721_vm8 = vcmp.lt.s32.totalorder %v2890_v6, 1 }
  0xb2   :  { %v660_v63 = vshrl.u32 %v642_v55, %v658_v45  ;;  %v663_v28 = vadd.s32 127, %v662_v22  ;;  %v714_v26 = vor.u32 %v713_v39, %v712_v11  ;;  %vm722_vm9 = vcmp.lt.s32.totalorder %v2890_v6, 2 }
  0xb3   :  { %v1967_v20 = vsub.f32 %v1951_v34, %v1959_v53  ;;  %v2922_v15 = vpop.eup %2178  ;;  %v717_v36 = vor.u32 %v716_v31, %v715_v9  ;;  %vm723_vm10 = vcmp.lt.s32.totalorder %v2890_v6, 3  ;;  %v720_v59 = vor.u32 %v719_v21, %v718_v30 }
  0xb4   :  { %v661_v50 = vor.u32 %v660_v63, %v659_v10  ;;  %v664_v55 = vshll.u32 %v663_v28, 23  ;;  %vm724_vm11 = vcmp.lt.s32.totalorder %v2890_v6, 4  ;;  %v725_v49 = vsel %vm721_vm8, %v705_v44, %v708_v1 }
  0xb5   :  { %1975 = vst [vmem:[#allocation8 + $0x10] sm:$0xff] %v1967_v20  ;;  %v726_v60 = vsel %vm724_vm11, %v714_v26, 2102212464  ;;  %v729_v34 = vsel %vm721_vm8, %v708_v1, %v711_v5  ;;  %v730_v53 = vsel %vm724_vm11, %v717_v36, 920167782  ;;  %v733_v28 = vsel %vm721_vm8, %v711_v5, %v714_v26 }
  0xb6   :  { %v668_v11 = vcvt.s32.f32 %v661_v50  ;;  %v665_v45 = vor.u32 4788187, %v664_v55  ;;  %v727_v31 = vsel %vm723_vm10, %v711_v5, %v726_v60  ;;  %v731_v10 = vsel %vm723_vm10, %v714_v26, %v730_v53  ;;  %v2964_v55 = vld [vmem:[#allocation5 + $0x28] sm:$0xff] }
  0xb7   :  { %v160_v30 = vsub.f32 2.0, %v2873_v8  ;;  %v732_v21 = vsel %vm722_vm9, %v729_v34, %v731_v10  ;;  %v734_v44 = vsel %vm724_vm11, %v720_v59, 1326507024  ;;  %v673_v26 = vsel %vm588_vm12, %v672_v46, %v2846_v61 }
  0xb8   :  { %v666_v1 = vand.u32 2147483647, %v665_v45  ;;  %v735_v22 = vsel %vm723_vm10, %v717_v36, %v734_v44  ;;  %v2944_v39 = vmul.u32.u64.low %v2885_v37, %v732_v21  ;;  %v2945_v9 = vmul.u32.u64.high %v2885_v37, %v732_v21, %v2944_v39 }
  0xb9   :  { %v728_v8 = vsel %vm722_vm9, %v725_v49, %v727_v31  ;;  %v736_v5 = vsel %vm722_vm9, %v733_v28, %v735_v22  ;;  %v2958_v20 = vadd.f32 1.0, %v2854_v32  ;;  %v796_v59 = vshrl.u32 %v795_v42, 23 }
  0xba   :  { %v669_v63 = vmul.f32 %v668_v11, %v666_v1  ;;  %v2961_v50 = vmul.u32.u64.low %v2885_v37, %v736_v5  ;;  %v2962_v36 = vmul.u32.u64.high %v2885_v37, %v736_v5, %v2961_v50  ;;  %v168_v61 = vmul.f32 %v2763_v16, %v160_v30 }
  0xbb   :  { %v176_v46 = vmul.f32 %v2860_v38, %v2614_v47  ;;  %v184_v6 = vmul.f32 %v2863_v29, %v2643_v24  ;;  %v3559_v49 = vand.u32 2147483647, %v2646_v23  ;;  %v744_v60 = vmul.u32 %v2885_v37, %v728_v8 }
  0xbc   :  { %v670_v11 = vxor.u32 2147483648, %v669_v63  ;;  %v747_v34 = vadd.s32 1, %v2945_v9  ;;  %v2063_v53 = vadd.s32 4294967169, %v796_v59  ;;  %v200_v42 = vmul.f32 %v2860_v38, %v2643_v24 }
  0xbd   :  { %vm587_vm13 = vcmp.le.f32.partialorder %v3559_v49, 0.7853982  ;;  %v2981_v16 = vmul.f32 %v2958_v20, %v2958_v20  ;;  %v2985_v31 = vmul.f32 %v2964_v55, %v2964_v55  ;;  %v208_v10 = vmul.f32 %v2863_v29, %v2614_v47 }
  0xbe   :  { %v675_v45 = vsel %vm587_vm13, 0, %v673_v26  ;;  %v671_v37 = vsel %vm588_vm12, %v670_v11, %v669_v63  ;;  %vm746_vm14 = vc.u32 %v2962_v36, %v2944_v39  ;;  %v802_v28 = vadd.s32 1, %v2063_v53 }
  0xbf   :  { %v264_v24 = vmul.f32 4.0, %v168_v61  ;;  %v674_v38 = vsel %vm587_vm13, %v2646_v23, %v671_v37  ;;  %v225_v30 = vmul.f32 %v2795_v52, %v2805_v13  ;;  %v748_v21 = vsel %vm746_vm14, %v747_v34, %v2945_v9 }
  0xc0   :  { %2180 = vcosq.f32 %v674_v38  ;;  %v1514_v44 = vadd.s32 3, %v675_v45  ;;  %v749_v1 = vadd.s32 %v748_v21, %v744_v60  ;;  %vm803_vm15 = vcmp.gt.s32.totalorder %v802_v28, 0 }
  0xc1   :  { %2182 = vsinq.f32 %v674_v38  ;;  %v106_v47 = vadd.f32 %v2985_v31, %v2981_v16  ;;  %v3533_v29 = vand.u32 2147483647, %v2881_v57  ;;  %v804_v22 = vsel %vm803_vm15, %v802_v28, 0 }
  0xc2   :  { %v3000_v26 = vadd.f32 %v184_v6, %v176_v46  ;;  %v3002_v8 = vsub.f32 %v200_v42, %v208_v10  ;;  %v750_v5 = vadd.s32 536870912, %v749_v1  ;;  %v806_v63 = vand.u32 31, %v804_v22 }
  0xc3   :  { %v3005_v52 = vmul.f32 %v2916_v17, %v264_v24  ;;  %v3007_v9 = vand.u32 3, %v675_v45  ;;  %v3010_v50 = vmul.f32 2.0, %v2798_v41  ;;  %v3012_v59 = vmul.f32 1.442695, %v225_v30 }
  0xc4   :  { %v3014_v61 = vand.u32 3, %v1514_v44  ;;  %v3018_v46 = vmul.f32 %v2922_v15, %v2865_v56  ;;  %v3020_v6 = vshrl.u32 %v750_v5, 30  ;;  %v807_v49 = vsub.s32 32, %v806_v63 }
  0xc5   :  { %v3022_v11 = vmul.f32 %v106_v47, %v106_v47  ;;  %v799_v17 = vand.u32 8388607, %v3533_v29  ;;  %v3560_v60 = vmov 683565275   ;;  %v818_v41 = vshll.u32 %v3534_v33, %v806_v63 }
  0xc6   :  { %v809_v34 = vshll.u32 %v3560_v60, %v806_v63  ;;  %v752_v53 = vshll.u32 %v3020_v6, 30  ;;  %v3561_v42 = vmov 2475754826   ;;  %v3562_v56 = vmov 2131351028  }
  0xc7   :  { %v810_v45 = vshrl.u32 %v3561_v42, %v807_v49  ;;  %v812_v10 = vshll.u32 %v3561_v42, %v806_v63  ;;  %v815_v37 = vshll.u32 %v3562_v56, %v806_v63  ;;  %vm680_vm0 = vcmp.lt.s32.totalorder %v3007_v9, 2 }
  0xc8   :  { %v3033_v28 = vshrl.u32 %v804_v22, 5  ;;  %v813_v24 = vshrl.u32 %v3562_v56, %v807_v49  ;;  %v816_v38 = vshrl.u32 %v3534_v33, %v807_v49  ;;  %v819_v30 = vshrl.u32 %v3548_v35, %v807_v49 }
  0xc9   :  { %vm678_vm1 = vweird.f32 %v2646_v23  ;;  %vm681_vm2 = vcmp.eq.s32.totalorder %v3007_v9, 0  ;;  %vm684_vm3 = vcmp.eq.s32.totalorder %v3007_v9, 2  ;;  %vm1516_vm4 = vcmp.lt.s32.totalorder %v3014_v61, 2 }
  0xca   :  { %v3042_v21 = vsub.s32 %v749_v1, %v752_v53  ;;  %v800_v44 = vor.u32 8388608, %v799_v17  ;;  %v820_v47 = vor.u32 %v819_v30, %v818_v41  ;;  %v821_v22 = vshll.u32 %v3548_v35, %v806_v63 }
  0xcb   :  { %v822_v5 = vshrl.u32 %v3540_v43, %v807_v49  ;;  %v811_v33 = vor.u32 %v810_v45, %v809_v34  ;;  %v814_v4 = vor.u32 %v813_v24, %v812_v10  ;;  %v817_v19 = vor.u32 %v816_v38, %v815_v37 }
  0xcc   :  { %v755_v29 = vsub.s32 0, %v3042_v21  ;;  %v808_v2 = vshrl.u32 %v3560_v60, %v807_v49  ;;  %vm824_vm5 = vcmp.lt.s32.totalorder %v3033_v28, 1  ;;  %vm826_vm6 = vcmp.lt.s32.totalorder %v3033_v28, 3 }
  0xcd   :  { %vm827_vm7 = vcmp.lt.s32.totalorder %v3033_v28, 4  ;;  %vm1517_vm8 = vcmp.eq.s32.totalorder %v3014_v61, 0  ;;  %vm1520_vm9 = vcmp.eq.s32.totalorder %v3014_v61, 2  ;;  %v745_v1 = vadd.s32 %v2944_v39, %v2962_v36  ;;  %v2181_v17 = vpop.eup %2180 }
  0xce   :  { %v2060_v63 = vmin.u32 %v755_v29, %v3042_v21  ;;  %v823_v34 = vor.u32 %v822_v5, %v821_v22  ;;  %vm825_vm10 = vcmp.lt.s32.totalorder %v3033_v28, 2  ;;  %v829_v49 = vsel %vm827_vm7, %v817_v19, 2102212464  ;;  %v2183_v53 = vpop.eup %2182 }
  0xcf   :  { %v833_v41 = vsel %vm827_vm7, %v820_v47, 920167782  ;;  %v685_v45 = vxor.u32 2147483648, %v2181_v17  ;;  %v832_v37 = vsel %vm824_vm5, %v811_v33, %v814_v4  ;;  %v682_v36 = vxor.u32 2147483648, %v2183_v53 }
  0xd0   :  { %v757_v10 = vclz %v2060_v63  ;;  %v834_v39 = vsel %vm826_vm6, %v817_v19, %v833_v41  ;;  %v828_v29 = vsel %vm824_vm5, %v808_v2, %v811_v33  ;;  %v836_v24 = vsel %vm824_vm5, %v814_v4, %v817_v19 }
  0xd1   :  { %v840_v38 = vshll.u32 %v800_v44, 8  ;;  %v686_v30 = vsel %vm684_vm3, %v685_v45, %v2183_v53  ;;  %v1522_v22 = vsel %vm1520_vm9, %v685_v45, %v2183_v53  ;;  %v830_v63 = vsel %vm826_vm6, %v814_v4, %v829_v49 }
  0xd2   :  { %v2061_v5 = vadd.s32 4294967294, %v757_v10  ;;  %v683_v41 = vsel %vm681_vm2, %v2181_v17, %v682_v36  ;;  %v1519_v33 = vsel %vm1517_vm8, %v2181_v17, %v682_v36  ;;  %v835_v19 = vsel %vm825_vm10, %v832_v37, %v834_v39  ;;  %v3095_v10 = vld [vmem:[#allocation2 + $0x30] sm:$0xff] }
  0xd3   :  { %v837_v2 = vsel %vm827_vm7, %v823_v34, 1326507024  ;;  %v687_v44 = vsel %vm680_vm0, %v683_v41, %v686_v30  ;;  %v1523_v53 = vsel %vm1516_vm4, %v1519_v33, %v1522_v22  ;;  %3563 = vst [vmem:[#allocation18_spill] sm:$0xff] %v3095_v10  ;;  %2184 = vrcp.f32 %v3022_v11 }
  0xd4   :  { %vm2062_vm11 = vcmp.lt.s32.totalorder %v2061_v5, 0  ;;  %v838_v4 = vsel %vm826_vm6, %v820_v47, %v837_v2  ;;  %v688_v49 = vsel %vm678_vm1, nan, %v687_v44  ;;  %v1524_v17 = vsel %vm678_vm1, nan, %v1523_v53  ;;  %v3119_v2 = vld [vmem:[#allocation7 + $0x30] sm:$0xff] }
  0xd5   :  { %v760_v45 = vsel %vm2062_vm11, 0, %v2061_v5  ;;  %v839_v34 = vsel %vm825_vm10, %v836_v24, %v838_v4  ;;  %v3098_v9 = vmul.f32 %v688_v49, %v3005_v52  ;;  %v3101_v61 = vmul.f32 %v1524_v17, %v3005_v52  ;;  %3564 = vst [vmem:[#allocation19_spill] sm:$0xff] %v3119_v2 }
  0xd6   :  { %v761_v37 = vsub.s32 32, %v760_v45  ;;  %v762_v47 = vshll.u32 %v3042_v21, %v760_v45  ;;  %v765_v39 = vsub.s32 4294967266, %v760_v45  ;;  %v251_v5 = vsub.f32 1.0, %v3095_v10 }
  0xd7   :  { %v3105_v23 = vmul.u32.u64.low %v840_v38, %v839_v34  ;;  %v3106_v36 = vmul.u32.u64.high %v840_v38, %v839_v34, %v3105_v23  ;;  %v1952_v24 = vmul.f32 %v3098_v9, %v3000_v26  ;;  %v1960_v30 = vmul.f32 %v3101_v61, %v3002_v8 }
  0xd8   :  { %v763_v22 = vshrl.u32 %v745_v1, %v761_v37  ;;  %v766_v52 = vadd.s32 127, %v765_v39  ;;  %v831_v41 = vsel %vm825_vm10, %v828_v29, %v830_v63  ;;  %v121_v53 = vsub.f32 %v2826_v7, %v2830_v54 }
  0xd9   :  { %v3115_v21 = vmul.u32.u64.low %v840_v38, %v835_v19  ;;  %v3116_v33 = vmul.u32.u64.high %v840_v38, %v835_v19, %v3115_v21  ;;  %v1968_v44 = vsub.f32 %v1952_v24, %v1960_v30  ;;  %v137_v1 = vmul.f32 %v3010_v50, %v2805_v13 }
  0xda   :  { %v764_v4 = vor.u32 %v763_v22, %v762_v47  ;;  %2186 = vpow2.f32 %v3012_v59  ;;  %v767_v49 = vshll.u32 %v766_v52, 23  ;;  %v775_v28 = vsub.s32 4, %v3020_v6 }
  0xdb   :  { %1976 = vst [vmem:[#allocation8 + $0x18] sm:$0xff] %v1968_v44  ;;  %v161_v29 = vsub.f32 2.0, %v3018_v46  ;;  %v847_v63 = vmul.u32 %v840_v38, %v831_v41  ;;  %vm849_vm12 = vc.u32 %v3106_v36, %v3115_v21  ;;  %v3131_v19 = vmul.f32 %v251_v5, %v3119_v2 }
  0xdc   :  { %v768_v7 = vor.u32 4788187, %v767_v49  ;;  %v771_v54 = vcvt.s32.f32 %v764_v4  ;;  %v850_v17 = vadd.s32 1, %v3116_v33  ;;  %v177_v50 = vmul.f32 %v121_v53, %v2774_v25 }
  0xdd   :  { %3565 = vst [vmem:[#allocation20_spill] sm:$0xff] %v3131_v19  ;;  %v201_v59 = vmul.f32 %v121_v53, %v2805_v13  ;;  %vm691_vm13 = vcmp.lt.s32.totalorder %v2815_v3, 0  ;;  %v898_v45 = vand.u32 2139095040, %v3131_v19  ;;  %v185_v46 = vmul.f32 %v137_v1, %v2805_v13 }
  0xde   :  { %v769_v38 = vand.u32 2147483647, %v768_v7  ;;  %v776_v34 = vsel %vm691_vm13, %v775_v28, %v3020_v6  ;;  %v851_v37 = vsel %vm849_vm12, %v850_v17, %v3116_v33  ;;  %v169_v47 = vmul.f32 %v2922_v15, %v161_v29 }
  0xdf   :  { %v209_v39 = vmul.f32 %v137_v1, %v2774_v25  ;;  %v852_v23 = vadd.s32 %v851_v37, %v847_v63  ;;  %v899_v24 = vshrl.u32 %v898_v45, 23  ;;  %v3566_v30 = vand.u32 2147483647, %v2815_v3 }
  0xe0   :  { %v772_v13 = vmul.f32 %v771_v54, %v769_v38  ;;  %v226_v5 = vmul.f32 %v2875_v0, %v2964_v55  ;;  %v3155_v15 = vadd.f32 %v185_v46, %v177_v50  ;;  %v122_v33 = vsub.f32 %v2981_v16, %v2985_v31  ;;  %v3160_v53 = vpop.eup %2184  ;;  %v3179_v50 = vld [vmem:[#allocation5 + $0x30] sm:$0xff] }
  0xe1   :  { %vm3147_vm14 = vcmp.le.f32.partialorder %v3566_v30, 0.7853982  ;;  %v853_v52 = vadd.s32 536870912, %v852_v23  ;;  %v2067_v41 = vadd.s32 4294967169, %v899_v24  ;;  %v3539_v44 = vand.u32 2147483647, %v3131_v19 }
  0xe2   :  { %v778_v6 = vsel %vm3147_vm14, 0, %v776_v34  ;;  %v773_v25 = vxor.u32 2147483648, %v772_v13  ;;  %v3162_v4 = vsub.f32 %v201_v59, %v209_v39  ;;  %v265_v1 = vmul.f32 4.0, %v169_v47 }
  0xe3   :  { %v3164_v49 = vshrl.u32 %v853_v52, 30  ;;  %v905_v0 = vadd.s32 1, %v2067_v41  ;;  %v1618_v29 = vadd.s32 3, %v778_v6  ;;  %v130_v63 = vmul.f32 2.0, %v2958_v20 }
  0xe4   :  { %v774_v28 = vsel %vm691_vm13, %v773_v25, %v772_v13  ;;  %v239_v7 = vmul.f32 1.442695, %v226_v5  ;;  %v3174_v54 = vadd.f32 1.0, %v3095_v10  ;;  %v3177_v17 = vmul.f32 %v122_v33, %v2854_v32 }
  0xe5   :  { %v777_v16 = vsel %vm3147_vm14, %v2815_v3, %v774_v28  ;;  %v855_v31 = vshll.u32 %v3164_v49, 30  ;;  %vm906_vm15 = vcmp.gt.s32.totalorder %v905_v0, 0  ;;  %v902_v20 = vand.u32 8388607, %v3539_v44 }
  0xe6   :  { %3569 = vst [vmem:[#allocation21_spill] sm:$0xff] %v3174_v54  ;;  %2188 = vcosq.f32 %v777_v16  ;;  %v907_v59 = vsel %vm906_vm15, %v905_v0, 0  ;;  %v3183_v46 = vand.u32 3, %v778_v6  ;;  %v3187_v38 = vmul.f32 %v3160_v53, %v3022_v11 }
  0xe7   :  { %v2187_v45 = vpop.eup %2186  ;;  %2190 = vsinq.f32 %v777_v16  ;;  %v3189_v34 = vsub.s32 %v852_v23, %v855_v31  ;;  %v3191_v37 = vand.u32 3, %v1618_v29  ;;  %v3194_v47 = vmul.f32 %v130_v63, %v2964_v55 }
  0xe8   :  { %v3197_v39 = vmul.f32 %v122_v33, %v2964_v55  ;;  %v909_v24 = vand.u32 31, %v907_v59  ;;  %2192 = vpow2.f32 %v239_v7  ;;  %v3202_v22 = vmul.f32 %v3174_v54, %v3174_v54  ;;  %v3216_v33 = vld [vmem:[#allocation2 + $0x38] sm:$0xff] }
  0xe9   :  { %v858_v30 = vsub.s32 0, %v3189_v34  ;;  %v3206_v11 = vmul.f32 %v3179_v50, %v3179_v50  ;;  %v3208_v23 = vmul.f32 %v2187_v45, %v265_v1  ;;  %v903_v13 = vor.u32 8388608, %v902_v20 }
  0xea   :  { %v3210_v5 = vshrl.u32 %v907_v59, 5  ;;  %v910_v6 = vsub.s32 32, %v909_v24  ;;  %vm787_vm0 = vcmp.eq.s32.totalorder %v3183_v46, 2  ;;  %v912_v25 = vshll.u32 %v3560_v60, %v909_v24 }
  0xeb   :  { %v2064_v41 = vmin.u32 %v858_v30, %v3189_v34  ;;  %vm784_vm1 = vcmp.eq.s32.totalorder %v3183_v46, 0  ;;  %vm1621_vm2 = vcmp.eq.s32.totalorder %v3191_v37, 0  ;;  %vm1624_vm3 = vcmp.eq.s32.totalorder %v3191_v37, 2 }
  0xec   :  { %v913_v1 = vshrl.u32 %v3561_v42, %v910_v6  ;;  %v915_v0 = vshll.u32 %v3561_v42, %v909_v24  ;;  %v916_v28 = vshrl.u32 %v3562_v56, %v910_v6  ;;  %vm783_vm4 = vcmp.lt.s32.totalorder %v3183_v46, 2 }
  0xed   :  { %vm1620_vm5 = vcmp.lt.s32.totalorder %v3191_v37, 2  ;;  %v860_v29 = vclz %v2064_v41  ;;  %v918_v63 = vshll.u32 %v3562_v56, %v909_v24  ;;  %v3570_v7 = vmov 2102212464  }
  0xee   :  { %v919_v16 = vshrl.u32 %v3570_v7, %v910_v6  ;;  %v921_v31 = vshll.u32 %v3570_v7, %v909_v24  ;;  %vm781_vm6 = vweird.f32 %v2815_v3  ;;  %v848_v20 = vadd.s32 %v3115_v21, %v3106_v36 }
  0xef   :  { %vm927_vm7 = vcmp.lt.s32.totalorder %v3210_v5, 1  ;;  %v3233_v59 = vshll.u32 %v903_v13, 8  ;;  %v2065_v30 = vadd.s32 4294967294, %v860_v29  ;;  %v911_v41 = vshrl.u32 %v3560_v60, %v910_v6 }
  0xf0   :  { %v914_v44 = vor.u32 %v913_v1, %v912_v25  ;;  %v922_v52 = vshrl.u32 %v3548_v35, %v910_v6  ;;  %v917_v43 = vor.u32 %v916_v28, %v915_v0  ;;  %v920_v10 = vor.u32 %v919_v16, %v918_v63 }
  0xf1   :  { %v924_v54 = vshll.u32 %v3548_v35, %v909_v24  ;;  %v3571_v19 = vmov 1326507024   ;;  %vm2066_vm8 = vcmp.lt.s32.totalorder %v2065_v30, 0  ;;  %vm928_vm9 = vcmp.lt.s32.totalorder %v3210_v5, 2 }
  0xf2   :  { %v925_v2 = vshrl.u32 %v3571_v19, %v910_v6  ;;  %v923_v36 = vor.u32 %v922_v52, %v921_v31  ;;  %vm930_vm10 = vcmp.lt.s32.totalorder %v3210_v5, 4  ;;  %v863_v21 = vsel %vm2066_vm8, 0, %v2065_v30 }
  0xf3   :  { %vm929_vm11 = vcmp.lt.s32.totalorder %v3210_v5, 3  ;;  %v932_v25 = vsel %vm930_vm10, %v920_v10, 2102212464  ;;  %v2189_v1 = vpop.eup %2188  ;;  %v864_v0 = vsub.s32 32, %v863_v21  ;;  %v865_v28 = vshll.u32 %v3189_v34, %v863_v21 }
  0xf4   :  { %v926_v13 = vor.u32 %v925_v2, %v924_v54  ;;  %v868_v24 = vsub.s32 4294967266, %v863_v21  ;;  %v931_v6 = vsel %vm927_vm7, %v911_v41, %v914_v44  ;;  %v2191_v52 = vpop.eup %2190  ;;  %v788_v29 = vxor.u32 2147483648, %v2189_v1 }
  0xf5   :  { %v933_v63 = vsel %vm929_vm11, %v917_v43, %v932_v25  ;;  %v935_v2 = vsel %vm927_vm7, %v914_v44, %v917_v43  ;;  %v936_v54 = vsel %vm930_vm10, %v923_v36, 920167782  ;;  %v785_v16 = vxor.u32 2147483648, %v2191_v52  ;;  %v3257_v41 = vpop.eup %2192 }
  0xf6   :  { %vm794_vm12 = vcmp.lt.s32.totalorder %v2881_v57, 0  ;;  %v866_v31 = vshrl.u32 %v848_v20, %v864_v0  ;;  %v869_v34 = vadd.s32 127, %v868_v24  ;;  %v937_v30 = vsel %vm929_vm11, %v920_v10, %v936_v54 }
  0xf7   :  { %v789_v21 = vsel %vm787_vm0, %v788_v29, %v2191_v52  ;;  %v1626_v25 = vsel %vm1624_vm3, %v788_v29, %v2191_v52  ;;  %v939_v44 = vsel %vm927_vm7, %v917_v43, %v920_v10  ;;  %v940_v35 = vsel %vm930_vm10, %v926_v13, 1326507024 }
  0xf8   :  { %v786_v20 = vsel %vm784_vm1, %v2189_v1, %v785_v16  ;;  %v1623_v0 = vsel %vm1621_vm2, %v2189_v1, %v785_v16  ;;  %v867_v24 = vor.u32 %v866_v31, %v865_v28  ;;  %v870_v54 = vshll.u32 %v869_v34, 23  ;;  %v3288_v31 = vld [vmem:[#allocation7 + $0x38] sm:$0xff] }
  0xf9   :  { %v790_v45 = vsel %vm783_vm4, %v786_v20, %v789_v21  ;;  %v1627_v52 = vsel %vm1620_vm5, %v1623_v0, %v1626_v25  ;;  %v938_v43 = vsel %vm928_vm9, %v935_v2, %v937_v30  ;;  %v941_v10 = vsel %vm929_vm11, %v923_v36, %v940_v35 }
  0xfa   :  { %v791_v13 = vsel %vm781_vm6, nan, %v790_v45  ;;  %v1628_v1 = vsel %vm781_vm6, nan, %v1627_v52  ;;  %v871_v28 = vor.u32 4788187, %v870_v54  ;;  %v874_v29 = vcvt.s32.f32 %v867_v24 }
  0xfb   :  { %v1105_v46 = vmul.f32 %v791_v13, %v3208_v23  ;;  %v1945_v16 = vmul.f32 %v1628_v1, %v3208_v23  ;;  %v878_v37 = vsub.s32 4, %v3164_v49  ;;  %v942_v2 = vsel %vm928_vm9, %v939_v44, %v941_v10 }
  0xfc   :  { %v872_v35 = vand.u32 2147483647, %v871_v28  ;;  %v934_v45 = vsel %vm928_vm9, %v931_v6, %v933_v63  ;;  %v3293_v3 = vmul.u32.u64.low %v3233_v59, %v942_v2  ;;  %v3294_v36 = vmul.u32.u64.high %v3233_v59, %v942_v2, %v3293_v3  ;;  %v3578_v2 = vld [vmem:[#allocation15_spill] sm:$0xff] }
  0xfd   :  { %v1953_v34 = vmul.f32 %v1105_v46, %v3155_v15  ;;  %v1961_v30 = vmul.f32 %v1945_v16, %v3162_v4  ;;  %v3299_v23 = vmul.u32.u64.low %v3233_v59, %v938_v43  ;;  %v3300_v21 = vmul.u32.u64.high %v3233_v59, %v938_v43, %v3299_v23 }
  0xfe   :  { %v3572_v25 = vand.u32 2147483647, %v2881_v57  ;;  %v875_v5 = vmul.f32 %v874_v29, %v872_v35  ;;  %v3575_v6 = vsub.f32 1.0, %v3216_v33  ;;  %v1981_v20 = vmul.f32 %v2674_v62, %v2542_v51  ;;  %v3577_v29 = vld [vmem:[#allocation17_spill] sm:$0xff]  ;;  %v3579_v35 = vld [vmem:[#allocation16_spill] sm:$0xff] }
  0xff   :  { %v1969_v0 = vsub.f32 %v1953_v34, %v1961_v30  ;;  %v879_v24 = vsel %vm794_vm12, %v878_v37, %v3164_v49  ;;  %v950_v54 = vmul.u32 %v3233_v59, %v934_v45  ;;  %v1989_v52 = vmul.f32 %v2671_v12, %v2550_v58 }
 0x100   :  { %vm3305_vm13 = vcmp.le.f32.partialorder %v3572_v25, 0.7853982  ;;  %v3312_v63 = vmul.f32 %v3575_v6, %v3288_v31  ;;  %v876_v43 = vxor.u32 2147483648, %v875_v5  ;;  %vm952_vm14 = vc.u32 %v3294_v36, %v3299_v23 }
 0x101   :  { %v1982_v10 = vmul.f32 %v2746_v14, %v2711_v48  ;;  %v1990_v51 = vmul.f32 %v2744_v40, %v2714_v18  ;;  %1977 = vst [vmem:[#allocation8 + $0x20] sm:$0xff] %v1969_v0  ;;  %v186_v62 = vmul.f32 %v3194_v47, %v2964_v55  ;;  %v210_v49 = vmul.f32 %v3194_v47, %v2854_v32 }
 0x102   :  { %v953_v59 = vadd.s32 1, %v3300_v21  ;;  %v1001_v58 = vand.u32 2139095040, %v3312_v63  ;;  %v3576_v12 = vsub.f32 2.0, %v3187_v38  ;;  %v877_v48 = vsel %vm794_vm12, %v876_v43, %v875_v5 }
 0x103   :  { %v107_v18 = vadd.f32 %v3206_v11, %v3202_v22  ;;  %v1997_v40 = vadd.f32 %v1989_v52, %v1981_v20  ;;  %v880_v14 = vsel %vm3305_vm13, %v2881_v57, %v877_v48  ;;  %v881_v32 = vsel %vm3305_vm13, 0, %v879_v24 }
 0x104   :  { %v170_v13 = vmul.f32 %v3160_v53, %v3576_v12  ;;  %v954_v55 = vsel %vm952_vm14, %v953_v59, %v3300_v21  ;;  %v1002_v47 = vshrl.u32 %v1001_v58, 23  ;;  %2194 = vcosq.f32 %v880_v14 }
 0x105   :  { %v955_v38 = vadd.s32 %v954_v55, %v950_v54  ;;  %v998_v53 = vand.u32 2147483647, %v3312_v63  ;;  %2005 = vst [vmem:[#allocation9] sm:$0xff] %v1997_v40  ;;  %v1998_v1 = vadd.f32 %v1990_v51, %v1982_v10  ;;  %2196 = vsinq.f32 %v880_v14 }
 0x106   :  { %v2071_v28 = vadd.s32 4294967169, %v1002_v47  ;;  %v1983_v37 = vmul.f32 %v3577_v29, %v2848_v27  ;;  %v1991_v45 = vmul.f32 %v3579_v35, %v3578_v2  ;;  %v1722_v3 = vadd.s32 3, %v881_v32 }
 0x107   :  { %v956_v34 = vadd.s32 536870912, %v955_v38  ;;  %2006 = vst [vmem:[#allocation9 + $0x8] sm:$0xff] %v1998_v1  ;;  %v1984_v30 = vmul.f32 %v3101_v61, %v3000_v26  ;;  %v1992_v21 = vmul.f32 %v3098_v9, %v3002_v8  ;;  %v1985_v5 = vmul.f32 %v1945_v16, %v3155_v15 }
 0x108   :  { %v1008_v25 = vadd.s32 1, %v2071_v28  ;;  %v1999_v44 = vadd.f32 %v1991_v45, %v1983_v37  ;;  %v1993_v6 = vmul.f32 %v1105_v46, %v3162_v4  ;;  %v266_v20 = vmul.f32 4.0, %v170_v13 }
 0x109   :  { %v3358_v27 = vmul.f32 %v107_v18, %v107_v18  ;;  %v3360_v0 = vshrl.u32 %v956_v34, 30  ;;  %v2000_v24 = vadd.f32 %v1992_v21, %v1984_v30  ;;  %v885_v54 = vand.u32 3, %v881_v32 }
 0x10a   :  { %v1005_v52 = vand.u32 8388607, %v998_v53  ;;  %vm1009_vm15 = vcmp.gt.s32.totalorder %v1008_v25, 0  ;;  %2007 = vst [vmem:[#allocation9 + $0x10] sm:$0xff] %v1999_v44  ;;  %v2001_v26 = vadd.f32 %v1993_v6, %v1985_v5  ;;  %v1723_v8 = vand.u32 3, %v1722_v3 }
 0x10b   :  { %v958_v9 = vshll.u32 %v3360_v0, 30  ;;  %v1010_v61 = vsel %vm1009_vm15, %v1008_v25, 0  ;;  %2008 = vst [vmem:[#allocation9 + $0x18] sm:$0xff] %v2000_v24  ;;  %v3366_v15 = vadd.f32 %v186_v62, %v3177_v17  ;;  %v3369_v46 = vsub.f32 %v3197_v39, %v210_v49 }
 0x10c   :  { %v1012_v4 = vand.u32 31, %v1010_v61  ;;  %2009 = vst [vmem:[#allocation9 + $0x20] sm:$0xff] %v2001_v26  ;;  %v274_v16 = vmul.f32 %v3257_v41, %v266_v20  ;;  %vm884_vm0 = vweird.f32 %v2881_v57  ;;  %vm886_vm1 = vcmp.lt.s32.totalorder %v885_v54, 2 }
 0x10d   :  { %v3373_v43 = vsub.s32 %v955_v38, %v958_v9  ;;  %2198 = vrcp.f32 %v3358_v27  ;;  %v1006_v10 = vor.u32 8388608, %v1005_v52  ;;  %vm887_vm2 = vcmp.eq.s32.totalorder %v885_v54, 0 }
 0x10e   :  { %v1013_v51 = vsub.s32 32, %v1012_v4  ;;  %vm890_vm3 = vcmp.eq.s32.totalorder %v885_v54, 2  ;;  %vm1724_vm4 = vcmp.lt.s32.totalorder %v1723_v8, 2  ;;  %v1015_v62 = vshll.u32 %v3560_v60, %v1012_v4 }
 0x10f   :  { %v961_v17 = vsub.s32 0, %v3373_v43  ;;  %v1018_v41 = vshll.u32 %v3561_v42, %v1012_v4  ;;  %vm1725_vm5 = vcmp.eq.s32.totalorder %v1723_v8, 0  ;;  %v1021_v58 = vshll.u32 %v3562_v56, %v1012_v4 }
 0x110   :  { %v1016_v39 = vshrl.u32 %v3561_v42, %v1013_v51  ;;  %v1019_v49 = vshrl.u32 %v3562_v56, %v1013_v51  ;;  %v1022_v12 = vshrl.u32 %v3570_v7, %v1013_v51  ;;  %vm1728_vm6 = vcmp.eq.s32.totalorder %v1723_v8, 2 }
 0x111   :  { %v2068_v59 = vmin.u32 %v961_v17, %v3373_v43  ;;  %v2195_v13 = vpop.eup %2194  ;;  %v951_v48 = vadd.s32 %v3299_v23, %v3294_v36  ;;  %v3386_v18 = vshrl.u32 %v1010_v61, 5  ;;  %v3388_v40 = vshll.u32 %v1006_v10, 8 }
 0x112   :  { %v2197_v14 = vpop.eup %2196  ;;  %v891_v42 = vxor.u32 2147483648, %v2195_v13  ;;  %v1024_v55 = vshll.u32 %v3570_v7, %v1012_v4  ;;  %v3580_v47 = vmov 920167782   ;;  %v1014_v56 = vshrl.u32 %v3560_v60, %v1013_v51 }
 0x113   :  { %v963_v32 = vclz %v2068_v59  ;;  %v1025_v38 = vshrl.u32 %v3580_v47, %v1013_v51  ;;  %v888_v1 = vxor.u32 2147483648, %v2197_v14  ;;  %v1017_v28 = vor.u32 %v1016_v39, %v1015_v62 }
 0x114   :  { %v1020_v29 = vor.u32 %v1019_v49, %v1018_v41  ;;  %v892_v37 = vsel %vm890_vm3, %v891_v42, %v2197_v14  ;;  %v1730_v2 = vsel %vm1728_vm6, %v891_v42, %v2197_v14  ;;  %v1023_v23 = vor.u32 %v1022_v12, %v1021_v58 }
 0x115   :  { %v2069_v36 = vadd.s32 4294967294, %v963_v32  ;;  %v889_v35 = vsel %vm887_vm2, %v2195_v13, %v888_v1  ;;  %v1727_v45 = vsel %vm1725_vm5, %v2195_v13, %v888_v1  ;;  %v1027_v3 = vshll.u32 %v3580_v47, %v1012_v4  ;;  %v3581_v32 = vld [vmem:[#allocation19_spill] sm:$0xff] }
 0x116   :  { %v1028_v7 = vshrl.u32 %v3571_v19, %v1013_v51  ;;  %v893_v34 = vsel %vm886_vm1, %v889_v35, %v892_v37  ;;  %v1731_v30 = vsel %vm1724_vm4, %v1727_v45, %v1730_v2  ;;  %v1026_v60 = vor.u32 %v1025_v38, %v1024_v55  ;;  %v3582_v35 = vld [vmem:[#allocation20_spill] sm:$0xff] }
 0x117   :  { %vm2070_vm7 = vcmp.lt.s32.totalorder %v2069_v36, 0  ;;  %v894_v21 = vsel %vm884_vm0, nan, %v893_v34  ;;  %v1732_v25 = vsel %vm884_vm0, nan, %v1731_v30  ;;  %vm1030_vm8 = vcmp.lt.s32.totalorder %v3386_v18, 1 }
 0x118   :  { %v966_v44 = vsel %vm2070_vm7, 0, %v2069_v36  ;;  %v1106_v5 = vmul.f32 %v894_v21, %v274_v16  ;;  %v1946_v6 = vmul.f32 %v1732_v25, %v274_v16  ;;  %v1029_v54 = vor.u32 %v1028_v7, %v1027_v3  ;;  %v3584_v21 = vld [vmem:[#allocation21_spill] sm:$0xff] }
 0x119   :  { %v967_v20 = vsub.s32 32, %v966_v44  ;;  %v968_v19 = vshll.u32 %v3373_v43, %v966_v44  ;;  %v971_v24 = vsub.s32 4294967266, %v966_v44  ;;  %vm1032_vm9 = vcmp.lt.s32.totalorder %v3386_v18, 3 }
 0x11a   :  { %vm1033_vm10 = vcmp.lt.s32.totalorder %v3386_v18, 4  ;;  %v3408_v52 = vpop.eup %2198  ;;  %v1954_v26 = vmul.f32 %v1106_v5, %v3366_v15  ;;  %v1962_v57 = vmul.f32 %v1946_v6, %v3369_v46  ;;  %vm1031_vm11 = vcmp.lt.s32.totalorder %v3386_v18, 2 }
 0x11b   :  { %v969_v8 = vshrl.u32 %v951_v48, %v967_v20  ;;  %v972_v9 = vadd.s32 127, %v971_v24  ;;  %v1035_v61 = vsel %vm1033_vm10, %v1023_v23, 2102212464  ;;  %v1038_v4 = vsel %vm1030_vm8, %v1017_v28, %v1020_v29  ;;  %v3467_v20 = vld [vmem:[#allocation5 + $0x38] sm:$0xff] }
 0x11c   :  { %v1039_v16 = vsel %vm1033_vm10, %v1026_v60, 920167782  ;;  %v1970_v43 = vsub.f32 %v1954_v26, %v1962_v57  ;;  %v1034_v51 = vsel %vm1030_vm8, %v1014_v56, %v1017_v28  ;;  %v1036_v39 = vsel %vm1032_vm9, %v1020_v29, %v1035_v61 }
 0x11d   :  { %v970_v10 = vor.u32 %v969_v8, %v968_v19  ;;  %v1040_v17 = vsel %vm1032_vm9, %v1023_v23, %v1039_v16  ;;  %v973_v62 = vshll.u32 %v972_v9, 23  ;;  %v1042_v49 = vsel %vm1030_vm8, %v1020_v29, %v1023_v23 }
 0x11e   :  { %v1041_v41 = vsel %vm1031_vm11, %v1038_v4, %v1040_v17  ;;  %1978 = vst [vmem:[#allocation8 + $0x28] sm:$0xff] %v1970_v43  ;;  %v1043_v59 = vsel %vm1033_vm10, %v1029_v54, 1326507024  ;;  %v1986_v42 = vmul.f32 %v1946_v6, %v3366_v15  ;;  %v227_v55 = vmul.f32 %v3581_v32, %v3179_v50  ;;  %v3585_v4 = vld [vmem:[#allocation18_spill] sm:$0xff] }
 0x11f   :  { %v3432_v58 = vmul.u32.u64.low %v3388_v40, %v1041_v41  ;;  %v3433_v12 = vmul.u32.u64.high %v3388_v40, %v1041_v41, %v3432_v58  ;;  %v974_v13 = vor.u32 4788187, %v973_v62  ;;  %v977_v48 = vcvt.s32.f32 %v970_v10 }
 0x120   :  { %v1044_v14 = vsel %vm1032_vm9, %v1026_v60, %v1043_v59  ;;  %v1037_v47 = vsel %vm1031_vm11, %v1034_v51, %v1036_v39  ;;  %v1994_v1 = vmul.f32 %v1106_v5, %v3369_v46  ;;  %v241_v23 = vmul.f32 1.442695, %v227_v55 }
 0x121   :  { %v1045_v38 = vsel %vm1031_vm11, %v1042_v49, %v1044_v14  ;;  %v975_v56 = vand.u32 2147483647, %v974_v13  ;;  %v1056_v37 = vadd.s32 1, %v3433_v12  ;;  %v1053_v36 = vmul.u32 %v3388_v40, %v1037_v47 }
 0x122   :  { %v3447_v28 = vmul.u32.u64.low %v3388_v40, %v1045_v38  ;;  %v3448_v29 = vmul.u32.u64.high %v3388_v40, %v1045_v38, %v3447_v28  ;;  %v2002_v2 = vadd.f32 %v1994_v1, %v1986_v42  ;;  %vm897_vm12 = vcmp.lt.s32.totalorder %v3582_v35, 0 }
 0x123   :  { %v978_v15 = vmul.f32 %v977_v48, %v975_v56  ;;  %v981_v45 = vsub.s32 4, %v3360_v0  ;;  %v3583_v18 = vand.u32 2147483647, %v3582_v35  ;;  %v155_v40 = vmul.f32 %v3408_v52, %v3358_v27 }
 0x124   :  { %2010 = vst [vmem:[#allocation9 + $0x28] sm:$0xff] %v2002_v2  ;;  %vm1055_vm14 = vc.u32 %v3448_v29, %v3432_v58  ;;  %2200 = vpow2.f32 %v241_v23  ;;  %v131_v25 = vmul.f32 2.0, %v3584_v21  ;;  %v3465_v5 = vadd.f32 1.0, %v3216_v33 }
 0x125   :  { %vm896_vm13 = vcmp.le.f32.partialorder %v3583_v18, 0.7853982  ;;  %v979_v46 = vxor.u32 2147483648, %v978_v15  ;;  %v1057_v3 = vsel %vm1055_vm14, %v1056_v37, %v3433_v12  ;;  %v982_v30 = vsel %vm897_vm12, %v981_v45, %v3360_v0 }
 0x126   :  { %v1058_v34 = vadd.s32 %v1057_v3, %v1053_v36  ;;  %v984_v6 = vsel %vm896_vm13, 0, %v982_v30  ;;  %v163_v24 = vsub.f32 2.0, %v155_v40  ;;  %v123_v27 = vsub.f32 %v3202_v22, %v3206_v11 }
 0x127   :  { %v980_v7 = vsel %vm897_vm12, %v979_v46, %v978_v15  ;;  %v139_v0 = vmul.f32 %v131_v25, %v3179_v50  ;;  %v1826_v26 = vadd.s32 3, %v984_v6  ;;  %v3477_v57 = vmul.f32 %v3465_v5, %v3465_v5 }
 0x128   :  { %v983_v60 = vsel %vm896_vm13, %v3582_v35, %v980_v7  ;;  %v1059_v44 = vadd.s32 536870912, %v1058_v34  ;;  %v3481_v8 = vmul.f32 %v3467_v20, %v3467_v20  ;;  %v171_v61 = vmul.f32 %v3408_v52, %v163_v24 }
 0x129   :  { %2202 = vcosq.f32 %v983_v60  ;;  %v179_v16 = vmul.f32 %v123_v27, %v3585_v4  ;;  %v187_v22 = vmul.f32 %v139_v0, %v3179_v50  ;;  %v988_v43 = vand.u32 3, %v984_v6 }
 0x12a   :  { %2204 = vsinq.f32 %v983_v60  ;;  %v3469_v19 = vshrl.u32 %v1059_v44, 30  ;;  %v1827_v10 = vand.u32 3, %v1826_v26  ;;  %v108_v51 = vadd.f32 %v3481_v8, %v3477_v57 }
 0x12b   :  { %v267_v62 = vmul.f32 4.0, %v171_v61  ;;  %v195_v41 = vadd.f32 %v187_v22, %v179_v16  ;;  %v203_v49 = vmul.f32 %v123_v27, %v3179_v50  ;;  %v211_v59 = vmul.f32 %v139_v0, %v3585_v4 }
 0x12c   :  { %v1061_v54 = vshll.u32 %v3469_v19, 30  ;;  %vm987_vm15 = vweird.f32 %v3582_v35  ;;  %vm993_vm0 = vcmp.eq.s32.totalorder %v988_v43, 2  ;;  %vm1832_vm1 = vcmp.eq.s32.totalorder %v1827_v10, 2 }
 0x12d   :  { %v116_v13 = vmul.f32 %v108_v51, %v108_v51  ;;  %vm990_vm2 = vcmp.eq.s32.totalorder %v988_v43, 0  ;;  %vm1829_vm3 = vcmp.eq.s32.totalorder %v1827_v10, 0  ;;  %vm989_vm4 = vcmp.lt.s32.totalorder %v988_v43, 2 }
 0x12e   :  { %v1062_v9 = vsub.s32 %v1058_v34, %v1061_v54  ;;  %vm1828_vm5 = vcmp.lt.s32.totalorder %v1827_v10, 2  ;;  %v1054_v38 = vadd.s32 %v3432_v58, %v3448_v29  ;;  %v219_v1 = vsub.f32 %v203_v49, %v211_v59 }
 0x12f   :  { %2206 = vrcp.f32 %v116_v13  ;;  %v228_v35 = vmul.f32 %v3288_v31, %v3467_v20  ;;  %vm1000_vm7 = vcmp.lt.s32.totalorder %v3312_v63, 0  ;;  %vm999_vm8 = vcmp.le.f32.partialorder %v998_v53, 0.7853982 }
 0x130   :  { %v1064_v11 = vsub.s32 0, %v1062_v9  ;;  %v132_v51 = vmul.f32 2.0, %v3465_v5 }
 0x131   :  { %v2201_v39 = vpop.eup %2200  ;;  %v243_v26 = vmul.f32 1.442695, %v228_v35 }
 0x132   :  { %v2072_v17 = vmin.u32 %v1064_v11, %v1062_v9  ;;  %v275_v32 = vmul.f32 %v2201_v39, %v267_v62  ;;  %v124_v62 = vsub.f32 %v3477_v57, %v3481_v8  ;;  %v140_v39 = vmul.f32 %v132_v51, %v3467_v20 }
 0x133   :  { %2208 = vpow2.f32 %v243_v26 }
 0x134   :  { %v1066_v12 = vclz %v2072_v17 }
 0x136   :  { %v2203_v52 = vpop.eup %2202  ;;  %v2073_v42 = vadd.s32 4294967294, %v1066_v12 }
 0x137   :  { %v2205_v48 = vpop.eup %2204  ;;  %v994_v14 = vxor.u32 2147483648, %v2203_v52 }
 0x138   :  { %v991_v55 = vxor.u32 2147483648, %v2205_v48  ;;  %vm2074_vm6 = vcmp.lt.s32.totalorder %v2073_v42, 0 }
 0x139   :  { %v995_v47 = vsel %vm993_vm0, %v994_v14, %v2205_v48  ;;  %v1834_v50 = vsel %vm1832_vm1, %v994_v14, %v2205_v48  ;;  %v1069_v37 = vsel %vm2074_vm6, 0, %v2073_v42  ;;  %v204_v48 = vmul.f32 %v124_v62, %v3467_v20 }
 0x13a   :  { %v992_v56 = vsel %vm990_vm2, %v2203_v52, %v991_v55  ;;  %v1831_v28 = vsel %vm1829_vm3, %v2203_v52, %v991_v55  ;;  %v1070_v36 = vsub.s32 32, %v1069_v37  ;;  %v1071_v23 = vshll.u32 %v1062_v9, %v1069_v37 }
 0x13b   :  { %v996_v2 = vsel %vm989_vm4, %v992_v56, %v995_v47  ;;  %v1835_v15 = vsel %vm1828_vm5, %v1831_v28, %v1834_v50  ;;  %v1074_v46 = vsub.s32 4294967266, %v1069_v37  ;;  %v1084_v9 = vsub.s32 4, %v3469_v19 }
 0x13c   :  { %v997_v45 = vsel %vm987_vm15, nan, %v996_v2  ;;  %v1836_v18 = vsel %vm987_vm15, nan, %v1835_v15  ;;  %v1072_v58 = vshrl.u32 %v1054_v38, %v1070_v36  ;;  %v2207_v4 = vpop.eup %2206  ;;  %v212_v14 = vmul.f32 %v140_v39, %v3216_v33 }
 0x13d   :  { %v1107_v3 = vmul.f32 %v997_v45, %v275_v32  ;;  %v1947_v7 = vmul.f32 %v1836_v18, %v275_v32  ;;  %v1075_v29 = vadd.s32 127, %v1074_v46  ;;  %v1085_v22 = vsel %vm1000_vm7, %v1084_v9, %v3469_v19 }
 0x13e   :  { %v1073_v30 = vor.u32 %v1072_v58, %v1071_v23  ;;  %v156_v31 = vmul.f32 %v2207_v4, %v116_v13  ;;  %v1087_v43 = vsel %vm999_vm8, 0, %v1085_v22  ;;  %v180_v19 = vmul.f32 %v124_v62, %v3216_v33 }
 0x13f   :  { %v1955_v34 = vmul.f32 %v1107_v3, %v195_v41  ;;  %v1963_v40 = vmul.f32 %v1947_v7, %v219_v1  ;;  %v1987_v60 = vmul.f32 %v1947_v7, %v195_v41  ;;  %v1076_v21 = vshll.u32 %v1075_v29, 23 }
 0x140   :  { %v1995_v25 = vmul.f32 %v1107_v3, %v219_v1  ;;  %v1080_v24 = vcvt.s32.f32 %v1073_v30  ;;  %v164_v10 = vsub.f32 2.0, %v156_v31  ;;  %v1930_v17 = vadd.s32 3, %v1087_v43  ;;  %v2209_v59 = vpop.eup %2208 }
 0x141   :  { %v1971_v44 = vsub.f32 %v1955_v34, %v1963_v40  ;;  %v1077_v6 = vor.u32 4788187, %v1076_v21  ;;  %v1091_v41 = vand.u32 3, %v1087_v43  ;;  %v188_v13 = vmul.f32 %v140_v39, %v3467_v20 }
 0x142   :  { %v2003_v27 = vadd.f32 %v1995_v25, %v1987_v60  ;;  %v172_v53 = vmul.f32 %v2207_v4, %v164_v10  ;;  %v1931_v49 = vand.u32 3, %v1930_v17  ;;  %vm1090_vm15 = vweird.f32 %v3312_v63 }
 0x143   :  { %1979 = vst [vmem:[#allocation8 + $0x30] sm:$0xff] %v1971_v44  ;;  %v1078_v0 = vand.u32 2147483647, %v1077_v6  ;;  %vm1096_vm9 = vcmp.eq.s32.totalorder %v1091_v41, 2  ;;  %vm1093_vm11 = vcmp.eq.s32.totalorder %v1091_v41, 0  ;;  %vm1092_vm13 = vcmp.lt.s32.totalorder %v1091_v41, 2 }
 0x144   :  { %2011 = vst [vmem:[#allocation9 + $0x30] sm:$0xff] %v2003_v27  ;;  %v268_v12 = vmul.f32 4.0, %v172_v53  ;;  %vm1936_vm10 = vcmp.eq.s32.totalorder %v1931_v49, 2  ;;  %vm1933_vm12 = vcmp.eq.s32.totalorder %v1931_v49, 0  ;;  %vm1932_vm14 = vcmp.lt.s32.totalorder %v1931_v49, 2 }
 0x145   :  { %v1081_v54 = vmul.f32 %v1080_v24, %v1078_v0  ;;  %v196_v38 = vadd.f32 %v188_v13, %v180_v19  ;;  %v220_v20 = vsub.f32 %v204_v48, %v212_v14 }
 0x146   :  { %v276_v42 = vmul.f32 %v2209_v59, %v268_v12 }
 0x147   :  { %v1082_v61 = vxor.u32 2147483648, %v1081_v54 }
 0x149   :  { %v1083_v16 = vsel %vm1000_vm7, %v1082_v61, %v1081_v54 }
 0x14a   :  { %v1086_v11 = vsel %vm999_vm8, %v3312_v63, %v1083_v16 }
 0x14b   :  { %2210 = vcosq.f32 %v1086_v11 }
 0x14c   :  { %2212 = vsinq.f32 %v1086_v11 }
 0x158   :  { %v2211_v52 = vpop.eup %2210 }
 0x159   :  { %v2213_v5 = vpop.eup %2212  ;;  %v1097_v57 = vxor.u32 2147483648, %v2211_v52 }
 0x15a   :  { %v1094_v8 = vxor.u32 2147483648, %v2213_v5 }
 0x15b   :  { %v1098_v32 = vsel %vm1096_vm9, %v1097_v57, %v2213_v5  ;;  %v1938_v55 = vsel %vm1936_vm10, %v1097_v57, %v2213_v5 }
 0x15c   :  { %v1095_v47 = vsel %vm1093_vm11, %v2211_v52, %v1094_v8  ;;  %v1935_v50 = vsel %vm1933_vm12, %v2211_v52, %v1094_v8 }
 0x15d   :  { %v1099_v1 = vsel %vm1092_vm13, %v1095_v47, %v1098_v32  ;;  %v1939_v56 = vsel %vm1932_vm14, %v1935_v50, %v1938_v55 }
 0x15e   :  { %v1100_v28 = vsel %vm1090_vm15, nan, %v1099_v1  ;;  %v1940_v37 = vsel %vm1090_vm15, nan, %v1939_v56 }
 0x15f   :  { %v1108_v33 = vmul.f32 %v1100_v28, %v276_v42  ;;  %v1948_v2 = vmul.f32 %v1940_v37, %v276_v42 }
 0x161   :  { %v1956_v15 = vmul.f32 %v1108_v33, %v196_v38  ;;  %v1964_v36 = vmul.f32 %v1948_v2, %v220_v20  ;;  %v1988_v23 = vmul.f32 %v1948_v2, %v196_v38  ;;  %v1996_v45 = vmul.f32 %v1108_v33, %v220_v20 }
 0x163   :  { %v1972_v63 = vsub.f32 %v1956_v15, %v1964_v36  ;;  %v2004_v18 = vadd.f32 %v1996_v45, %v1988_v23 }
 0x165   :  { %1980 = vst [vmem:[#allocation8 + $0x38] sm:$0xff] %v1972_v63  ;;  %2012 = vst [vmem:[#allocation9 + $0x38] sm:$0xff] %v2004_v18 }
 0x166   :  { %2285 = shalt.err (!%p2282_p5)
}
 0x167   :  { %2022 = dma.vmem_to_hbm [thread:$0]  %s2020_s2, 1024, %s3523_s3, [#allocation4]  }
 0x168   :  { %s2294_s8 = scalar_lea.vmem %s2030_s30, 1024  ;;  %p2299_p7 = scmp.lt.s32.totalorder %s2030_s30, %s2030_s30 }
 0x169   :  { %p2295_p6 = scmp.ne.s32.totalorder %s2030_s30, %s2294_s8  ;;  %p2300_p8 = scmp.lt.s32.totalorder %s2294_s8, %s2294_s8 }
 0x16b   :  { %p2301_p9 = por %p2300_p8, %p2299_p7 }
 0x16d   :  { %p2302_p10 = pnand %p2301_p9, %p2295_p6 }
 0x16f   :  { %2305 = shalt.err (!%p2302_p10)
}
 0x170   :  { %2032 = dma.vmem_to_hbm [thread:$0]  %s2030_s30, 1024, %s3524_s4, [#allocation10]  }
 0x171   :  { %2318 = dma.done.wait [#allocation4], 1024  }
 0x172   :  { %2319 = vsyncadd [#allocation4], 4294966272 }
 0x173   :  { %2320 = dma.done.wait [#allocation10], 1024  }
 0x174   :  { %2321 = vsyncadd [#allocation10], 4294966272 }
 0x175   :  { %2039 = vsyncpa [#allocation3], 1 }
 0x176   :  { %2040 = vsyncpa [#allocation6], 1 }
 0x177   :  { %2041 = vsyncpa [#allocation4], 1 }
 0x178   :  { %2042 = vsyncpa [#allocation10], 1 }

</bundles_post_ra>
